<compile_context>
chip_gen: v7x
topology: tpu7x:2x2x1
jax: 0.10.0
libtpu: 0.0.40
codegen_flags: <defaults>
</compile_context>

<pallas_src>
import functools

import jax
import jax.numpy as jnp
import numpy as np
from jax.experimental import pallas as pl
from jax.experimental.pallas import tpu as pltpu


def _round_up(v, m):
    return (v + m - 1) // m * m


def _triplet_prcc_kernel(margin, x_blk_ref, xT_ref, sq_col_ref, sq_row_ref,
                         t_col_ref, t_row_ref, c_col_ref, c_row_ref,
                         valid_ref, num_ref):
    # --- gram on the MXU: canonical (tm, d) @ (d, n), f32 accumulate -------
    gram = jax.lax.dot_general(x_blk_ref[...], xT_ref[...],
                               (((1,), (0,)), ((), ())),
                               preferred_element_type=jnp.float32)   # (tm, n)

    # --- squared distances (both norm vectors precomputed in the wrapper) --
    dist2 = sq_col_ref[...] + sq_row_ref[...] - 2.0 * gram           # (tm, n)

    # --- masks (int32 compares, no float cam products) ---------------------
    same = t_col_ref[...] == t_row_ref[...]                          # (tm, n)
    prod = c_col_ref[...] * c_row_ref[...]                           # (tm, n)
    sel = jnp.logical_and(same, jnp.logical_or(prod == 3, prod == 6))

    # --- hardest negative per anchor: min over squared dists, sqrt on (tm,1)
    neg_ok = jnp.logical_and(jnp.logical_not(same), valid_ref[...] != 0)
    d2_an = jnp.min(jnp.where(neg_ok, dist2, jnp.inf), axis=1, keepdims=True)
    dist_an = jnp.sqrt(jnp.maximum(d2_an, 1e-12))                    # (tm, 1)

    # --- fused hinge epilogue: only dist2 + per_pair live as (tm,n) temps ---
    per_pair = jnp.where(
        sel,
        jnp.maximum(jnp.sqrt(jnp.maximum(dist2, 1e-12)) - dist_an + margin,
                    0.0),
        0.0)
    num = jnp.sum(jnp.sum(per_pair, axis=1, keepdims=True),
                  axis=0, keepdims=True)                             # (1, 1)
    num_ref[...] = num.reshape(1, 1, 1)


def triplet_loss_prcc(inputs, targets, cams, margin=0.3,
                      compute_dtype=jnp.bfloat16):
    """Pallas TPU TripletLossPRCC (euclidean distance)."""
    n, d = inputs.shape
    kind = jax.devices()[0].device_kind.lower()

    # --- generation-aware VMEM budget ---------------------------------------
    try:
        vmem_cap = int(pltpu.get_tpu_info().vmem_capacity_bytes)
    except Exception:
        vmem_cap = 64 << 20

    # --- generation-aware anchor-row block size ------------------------------
    tm = 128
    if "v7" in kind and _round_up(max(n, 128), 128) <= 128:
        tm = 64          # small batch: g >= 2 so both v7x TensorCores get work
    elif "v6" in kind and n >= 512:
        tm = 256         # v6e: 128 MiB VMEM absorbs the larger f32 epilogue

    d_pad = _round_up(d, 128)
    itemsize = jnp.dtype(compute_dtype).itemsize

    def _derive(tm_):
        align = max(tm_, 128)                      # lane alignment + grid
        n_pad_ = _round_up(max(n, align), align)
        est_ = (n_pad_ * d_pad * itemsize          # resident x^T (1-buffered)
                + 2 * tm_ * d_pad * itemsize       # double-buffered row block
                + 10 * tm_ * n_pad_ * 4            # (tm, n) f32/i32 temporaries
                + 6 * n_pad_ * 4                   # resident row vectors
                + (4 << 20))                       # headroom
        return n_pad_, est_

    n_pad, est = _derive(tm)
    if tm == 256 and est > 0.7 * vmem_cap:         # v6e bump only if it fits
        tm = 128
        n_pad, est = _derive(tm)
    g = n_pad // tm
    vmem_limit = int(min(max(est, 32 << 20), int(0.85 * vmem_cap)))

    # --- padded, dtype-converted inputs -------------------------------------
    x = inputs.astype(compute_dtype)
    x = jnp.pad(x, ((0, n_pad - n), (0, d_pad - d)))
    xT = x.T                                       # (d_pad, n_pad), lane-dense n
    t = jnp.pad(targets.astype(jnp.int32), (0, n_pad - n), constant_values=-1)
    c = jnp.pad(cams.astype(jnp.int32), (0, n_pad - n), constant_values=0)
    valid_row = (jnp.arange(n_pad, dtype=jnp.int32) < n).astype(jnp.int32)
    valid_row = valid_row.reshape(1, n_pad)

    # squared norms computed once (O(n*d)); consumed as both (tm,1) and (1,n)
    xf = x.astype(jnp.float32)
    sq = jnp.sum(xf * xf, axis=1)                  # (n_pad,)
    sq_col = sq.reshape(n_pad, 1)
    sq_row = sq.reshape(1, n_pad)

    t_col = t.reshape(n_pad, 1)
    t_row = t.reshape(1, n_pad)
    c_col = c.reshape(n_pad, 1)
    c_row = c.reshape(1, n_pad)

    # --- denominator depends only on targets/cams: count it in the wrapper --
    tt = targets.astype(jnp.int32)
    cc = cams.astype(jnp.int32)
    same_w = tt[:, None] == tt[None, :]
    prod_w = cc[:, None] * cc[None, :]
    den = jnp.sum(jnp.logical_and(same_w, (prod_w == 3) | (prod_w == 6))
                  .astype(jnp.float32))

    kernel = functools.partial(_triplet_prcc_kernel, float(margin))

    def _run(single_buffer_invariants):
        inv = ({"pipeline_mode": pl.Buffered(buffer_count=1)}
               if single_buffer_invariants else {})
        grid_spec = pltpu.PrefetchScalarGridSpec(
            num_scalar_prefetch=0,
            grid=(g,),
            in_specs=[
                pl.BlockSpec((tm, d_pad), lambda i: (i, 0)),            # x row
                pl.BlockSpec((d_pad, n_pad), lambda i: (0, 0), **inv),  # x^T
                pl.BlockSpec((tm, 1), lambda i: (i, 0)),                # sq col
                pl.BlockSpec((1, n_pad), lambda i: (0, 0), **inv),      # sq row
                pl.BlockSpec((tm, 1), lambda i: (i, 0)),                # t col
                pl.BlockSpec((1, n_pad), lambda i: (0, 0), **inv),      # t row
                pl.BlockSpec((tm, 1), lambda i: (i, 0)),                # c col
                pl.BlockSpec((1, n_pad), lambda i: (0, 0), **inv),      # c row
                pl.BlockSpec((1, n_pad), lambda i: (0, 0), **inv),      # valid
            ],
            out_specs=pl.BlockSpec((1, 1, 1), lambda i: (i, 0, 0)),     # num
        )
        return pl.pallas_call(
            kernel,
            out_shape=jax.ShapeDtypeStruct((g, 1, 1), jnp.float32),
            grid_spec=grid_spec,
            compiler_params=pltpu.CompilerParams(
                dimension_semantics=("parallel",),
                vmem_limit_bytes=vmem_limit),
        )(x, xT, sq_col, sq_row, t_col, t_row, c_col, c_row, valid_row)

    try:
        num_p = _run(True)
    except Exception:
        # pipeline_mode=Buffered(1) unsupported on this jax/Mosaic build;
        # fall back to default double-buffering (correctness identical).
        num_p = _run(False)

    num = jnp.sum(num_p)
    # guard: no qualifying pair -> 0.0 instead of NaN (PyTorch code crashes)
    return jnp.where(den > 0, num / jnp.maximum(den, 1.0), 0.0)


def _reference_loss(x, targets, cams, margin=0.3):
    """Numpy mirror of the PyTorch forward (loop semantics)."""
    x = np.asarray(x, np.float32)
    t = np.asarray(targets)
    c = np.asarray(cams, np.float32)
    n = x.shape[0]
    sq = (x ** 2).sum(1, keepdims=True)
    dist = sq + sq.T - 2.0 * (x @ x.T)
    dist = np.sqrt(np.clip(dist, 1e-12, None))
    same = t[:, None] == t[None, :]
    cam_mask = (c[:, None] * c[None, :]) * same.astype(np.float32)
    row_an = np.array([dist[i][~same[i]].min() for i in range(n)], np.float32)
    dist_ap, dist_an = [], []
    for i in range(n):
        for j in range(n):
            if cam_mask[i, j] == 6 or cam_mask[i, j] == 3:
                dist_ap.append(dist[i, j])
                dist_an.append(row_an[i])
    dist_ap = np.asarray(dist_ap, np.float32)
    dist_an = np.asarray(dist_an, np.float32)
    return float(np.mean(np.maximum(dist_ap - dist_an + margin, 0.0)))


if __name__ == "__main__":
    key = jax.random.PRNGKey(0)
    k1, k2, k3, k4 = jax.random.split(key, 4)

    # --- small case: 4 identities x 2 samples, cams hitting products 3 and 6
    n, d = 8, 32
    inputs = jax.random.normal(k1, (n, d), dtype=jnp.float32)
    targets = jnp.array([0, 0, 1, 1, 2, 2, 3, 3], dtype=jnp.int32)
    cams = jnp.array([1, 3, 2, 3, 1, 3, 2, 3], dtype=jnp.int32)

    loss = jax.block_until_ready(triplet_loss_prcc(inputs, targets, cams, 0.3))
    x_ref = np.asarray(inputs.astype(jnp.bfloat16), np.float32)  # same rounding
    ref = _reference_loss(x_ref, np.asarray(targets), np.asarray(cams), 0.3)
    np.testing.assert_allclose(float(loss), ref, rtol=2e-3, atol=2e-3)

    # --- larger case exercising padding + the multi-block "parallel" grid ---
    n2, d2 = 150, 96                      # pads to (256, 128) -> 2 row blocks
    x2 = jax.random.normal(k2, (n2, d2), dtype=jnp.float32)
    t2 = jax.random.randint(k3, (n2,), 0, 10, dtype=jnp.int32)
    c2 = jax.random.randint(k4, (n2,), 1, 4, dtype=jnp.int32)

    loss2 = jax.block_until_ready(triplet_loss_prcc(x2, t2, c2, 0.3))
    x2_ref = np.asarray(x2.astype(jnp.bfloat16), np.float32)
    ref2 = _reference_loss(x2_ref, np.asarray(t2), np.asarray(c2), 0.3)
    np.testing.assert_allclose(float(loss2), ref2, rtol=5e-3, atol=5e-3)

    print("KERNEL_OK")
</pallas_src>

<mosaic_0001>
module attributes {stable_mosaic.version = 11 : i64} {
  func.func @_triplet_prcc_kernel(%arg0: i32, %arg1: memref<128x128xbf16, #tpu.memory_space<vmem>>, %arg2: memref<128x128xbf16, #tpu.memory_space<vmem>>, %arg3: memref<128x1xf32, #tpu.memory_space<vmem>>, %arg4: memref<1x128xf32, #tpu.memory_space<vmem>>, %arg5: memref<128x1xi32, #tpu.memory_space<vmem>>, %arg6: memref<1x128xi32, #tpu.memory_space<vmem>>, %arg7: memref<128x1xi32, #tpu.memory_space<vmem>>, %arg8: memref<1x128xi32, #tpu.memory_space<vmem>>, %arg9: memref<1x128xi32, #tpu.memory_space<vmem>>, %arg10: memref<1x1x1xf32, #tpu.memory_space<vmem>>) attributes {dimension_semantics = [#tpu.dimension_semantics<parallel>], iteration_bounds = array<i64: 1>, scalar_prefetch = 0 : i64, scratch_operands = 0 : i64, tpu.core_type = #tpu.core_type<tc>, window_params = [{transform_indices = @transform_0, window_bounds = array<i64: 128, 128>}, {pipeline_mode = #tpu.pipeline_mode<synchronous>, transform_indices = @transform_1, window_bounds = array<i64: 128, 128>}, {transform_indices = @transform_2, window_bounds = array<i64: 128, 1>}, {pipeline_mode = #tpu.pipeline_mode<synchronous>, transform_indices = @transform_3, window_bounds = array<i64: 1, 128>}, {transform_indices = @transform_4, window_bounds = array<i64: 128, 1>}, {pipeline_mode = #tpu.pipeline_mode<synchronous>, transform_indices = @transform_5, window_bounds = array<i64: 1, 128>}, {transform_indices = @transform_6, window_bounds = array<i64: 128, 1>}, {pipeline_mode = #tpu.pipeline_mode<synchronous>, transform_indices = @transform_7, window_bounds = array<i64: 1, 128>}, {pipeline_mode = #tpu.pipeline_mode<synchronous>, transform_indices = @transform_8, window_bounds = array<i64: 1, 128>}, {transform_indices = @transform_9, window_bounds = array<i64: 1, 1, 1>}]} {
    %c0 = arith.constant 0 : index
    %c0_0 = arith.constant 0 : index
    %0 = vector.load %arg1[%c0, %c0_0] : memref<128x128xbf16, #tpu.memory_space<vmem>>, vector<128x128xbf16>
    %c0_1 = arith.constant 0 : index
    %c0_2 = arith.constant 0 : index
    %1 = vector.load %arg2[%c0_1, %c0_2] : memref<128x128xbf16, #tpu.memory_space<vmem>>, vector<128x128xbf16>
    %cst = arith.constant dense<0.000000e+00> : vector<128x128xf32>
    %2 = tpu.matmul %0, %1, %cst {dimension_numbers = #tpu.dot_dimension_numbers<[1], [0], [0], [1], [0, 0, 1, 1], [], []>} : vector<128x128xbf16>, vector<128x128xbf16>, vector<128x128xf32> -> vector<128x128xf32>
    %c0_3 = arith.constant 0 : index
    %c0_4 = arith.constant 0 : index
    %3 = vector.load %arg3[%c0_3, %c0_4] : memref<128x1xf32, #tpu.memory_space<vmem>>, vector<128x1xf32>
    %c0_5 = arith.constant 0 : index
    %c0_6 = arith.constant 0 : index
    %4 = vector.load %arg4[%c0_5, %c0_6] : memref<1x128xf32, #tpu.memory_space<vmem>>, vector<1x128xf32>
    %5 = vector.broadcast %3 : vector<128x1xf32> to vector<128x128xf32>
    %6 = vector.broadcast %4 : vector<1x128xf32> to vector<128x128xf32>
    %7 = arith.addf %5, %6 : vector<128x128xf32>
    %cst_7 = arith.constant 2.000000e+00 : f32
    %8 = vector.broadcast %cst_7 : f32 to vector<128x128xf32>
    %9 = arith.mulf %8, %2 : vector<128x128xf32>
    %10 = arith.subf %7, %9 : vector<128x128xf32>
    %c0_8 = arith.constant 0 : index
    %c0_9 = arith.constant 0 : index
    %11 = vector.load %arg5[%c0_8, %c0_9] : memref<128x1xi32, #tpu.memory_space<vmem>>, vector<128x1xi32>
    %c0_10 = arith.constant 0 : index
    %c0_11 = arith.constant 0 : index
    %12 = vector.load %arg6[%c0_10, %c0_11] : memref<1x128xi32, #tpu.memory_space<vmem>>, vector<1x128xi32>
    %13 = vector.broadcast %11 : vector<128x1xi32> to vector<128x128xi32>
    %14 = vector.broadcast %12 : vector<1x128xi32> to vector<128x128xi32>
    %15 = arith.cmpi eq, %13, %14 : vector<128x128xi32>
    %c0_12 = arith.constant 0 : index
    %c0_13 = arith.constant 0 : index
    %16 = vector.load %arg7[%c0_12, %c0_13] : memref<128x1xi32, #tpu.memory_space<vmem>>, vector<128x1xi32>
    %c0_14 = arith.constant 0 : index
    %c0_15 = arith.constant 0 : index
    %17 = vector.load %arg8[%c0_14, %c0_15] : memref<1x128xi32, #tpu.memory_space<vmem>>, vector<1x128xi32>
    %18 = vector.broadcast %16 : vector<128x1xi32> to vector<128x128xi32>
    %19 = vector.broadcast %17 : vector<1x128xi32> to vector<128x128xi32>
    %20 = arith.muli %18, %19 : vector<128x128xi32>
    %c3_i32 = arith.constant 3 : i32
    %21 = vector.broadcast %c3_i32 : i32 to vector<128x128xi32>
    %22 = arith.cmpi eq, %20, %21 : vector<128x128xi32>
    %c6_i32 = arith.constant 6 : i32
    %23 = vector.broadcast %c6_i32 : i32 to vector<128x128xi32>
    %24 = arith.cmpi eq, %20, %23 : vector<128x128xi32>
    %25 = arith.ori %22, %24 : vector<128x128xi1>
    %26 = arith.andi %15, %25 : vector<128x128xi1>
    %cst_16 = arith.constant dense<true> : vector<128x128xi1>
    %27 = arith.xori %15, %cst_16 : vector<128x128xi1>
    %c0_17 = arith.constant 0 : index
    %c0_18 = arith.constant 0 : index
    %28 = vector.load %arg9[%c0_17, %c0_18] : memref<1x128xi32, #tpu.memory_space<vmem>>, vector<1x128xi32>
    %c0_i32 = arith.constant 0 : i32
    %29 = vector.broadcast %c0_i32 : i32 to vector<1x128xi32>
    %30 = arith.cmpi ne, %28, %29 : vector<1x128xi32>
    %31 = vector.broadcast %30 : vector<1x128xi1> to vector<128x128xi1>
    %32 = arith.andi %27, %31 : vector<128x128xi1>
    %cst_19 = arith.constant 0x7F800000 : f32
    %33 = vector.broadcast %cst_19 : f32 to vector<128x128xf32>
    %34 = arith.select %32, %10, %33 : vector<128x128xi1>, vector<128x128xf32>
    %cst_20 = arith.constant dense<0x7F800000> : vector<128xf32>
    %35 = vector.multi_reduction <minimumf>, %34, %cst_20 [1] : vector<128x128xf32> to vector<128xf32>
    %36 = vector.shape_cast %35 : vector<128xf32> to vector<128x1xf32>
    %cst_21 = arith.constant 9.99999996E-13 : f32
    %37 = vector.broadcast %cst_21 : f32 to vector<128x1xf32>
    %38 = arith.maximumf %36, %37 : vector<128x1xf32>
    %39 = math.sqrt %38 : vector<128x1xf32>
    %cst_22 = arith.constant 9.99999996E-13 : f32
    %40 = vector.broadcast %cst_22 : f32 to vector<128x128xf32>
    %41 = arith.maximumf %10, %40 : vector<128x128xf32>
    %42 = math.sqrt %41 : vector<128x128xf32>
    %43 = vector.broadcast %39 : vector<128x1xf32> to vector<128x128xf32>
    %44 = arith.subf %42, %43 : vector<128x128xf32>
    %cst_23 = arith.constant 3.000000e-01 : f32
    %45 = vector.broadcast %cst_23 : f32 to vector<128x128xf32>
    %46 = arith.addf %44, %45 : vector<128x128xf32>
    %cst_24 = arith.constant 0.000000e+00 : f32
    %47 = vector.broadcast %cst_24 : f32 to vector<128x128xf32>
    %48 = arith.maximumf %46, %47 : vector<128x128xf32>
    %cst_25 = arith.constant 0.000000e+00 : f32
    %49 = vector.broadcast %cst_25 : f32 to vector<128x128xf32>
    %50 = arith.select %26, %48, %49 : vector<128x128xi1>, vector<128x128xf32>
    %cst_26 = arith.constant dense<0.000000e+00> : vector<128xf32>
    %51 = vector.multi_reduction <add>, %50, %cst_26 [1] : vector<128x128xf32> to vector<128xf32>
    %52 = vector.shape_cast %51 : vector<128xf32> to vector<128x1xf32>
    %cst_27 = arith.constant dense<0.000000e+00> : vector<1xf32>
    %53 = vector.multi_reduction <add>, %52, %cst_27 [0] : vector<128x1xf32> to vector<1xf32>
    %54 = vector.shape_cast %53 : vector<1xf32> to vector<1x1xf32>
    %55 = vector.shape_cast %54 : vector<1x1xf32> to vector<1x1x1xf32>
    %c0_28 = arith.constant 0 : index
    %c0_29 = arith.constant 0 : index
    %c0_30 = arith.constant 0 : index
    %56 = vector.load %arg10[%c0_28, %c0_29, %c0_30] : memref<1x1x1xf32, #tpu.memory_space<vmem>>, vector<1x1x1xf32>
    tpu.vector_store %arg10[%c0_28, %c0_29, %c0_30], %55 {strides = array<i32>} : memref<1x1x1xf32, #tpu.memory_space<vmem>>, vector<1x1x1xf32>,
    return
  }
  func.func @transform_0(%arg0: i32) -> (i32, i32) {
    %c0_i32 = arith.constant 0 : i32
    %c0_i32_0 = arith.constant 0 : i32
    return %arg0, %c0_i32 : i32, i32
  }
  func.func @transform_1(%arg0: i32) -> (i32, i32) {
    %c0_i32 = arith.constant 0 : i32
    %c0_i32_0 = arith.constant 0 : i32
    %c0_i32_1 = arith.constant 0 : i32
    return %c0_i32, %c0_i32_0 : i32, i32
  }
  func.func @transform_2(%arg0: i32) -> (i32, i32) {
    %c0_i32 = arith.constant 0 : i32
    %c0_i32_0 = arith.constant 0 : i32
    return %arg0, %c0_i32 : i32, i32
  }
  func.func @transform_3(%arg0: i32) -> (i32, i32) {
    %c0_i32 = arith.constant 0 : i32
    %c0_i32_0 = arith.constant 0 : i32
    %c0_i32_1 = arith.constant 0 : i32
    return %c0_i32, %c0_i32_0 : i32, i32
  }
  func.func @transform_4(%arg0: i32) -> (i32, i32) {
    %c0_i32 = arith.constant 0 : i32
    %c0_i32_0 = arith.constant 0 : i32
    return %arg0, %c0_i32 : i32, i32
  }
  func.func @transform_5(%arg0: i32) -> (i32, i32) {
    %c0_i32 = arith.constant 0 : i32
    %c0_i32_0 = arith.constant 0 : i32
    %c0_i32_1 = arith.constant 0 : i32
    return %c0_i32, %c0_i32_0 : i32, i32
  }
  func.func @transform_6(%arg0: i32) -> (i32, i32) {
    %c0_i32 = arith.constant 0 : i32
    %c0_i32_0 = arith.constant 0 : i32
    return %arg0, %c0_i32 : i32, i32
  }
  func.func @transform_7(%arg0: i32) -> (i32, i32) {
    %c0_i32 = arith.constant 0 : i32
    %c0_i32_0 = arith.constant 0 : i32
    %c0_i32_1 = arith.constant 0 : i32
    return %c0_i32, %c0_i32_0 : i32, i32
  }
  func.func @transform_8(%arg0: i32) -> (i32, i32) {
    %c0_i32 = arith.constant 0 : i32
    %c0_i32_0 = arith.constant 0 : i32
    %c0_i32_1 = arith.constant 0 : i32
    return %c0_i32, %c0_i32_0 : i32, i32
  }
  func.func @transform_9(%arg0: i32) -> (i32, i32, i32) {
    %c0_i32 = arith.constant 0 : i32
    %c0_i32_0 = arith.constant 0 : i32
    %c0_i32_1 = arith.constant 0 : i32
    return %arg0, %c0_i32, %c0_i32_0 : i32, i32, i32
  }
}

module attributes {stable_mosaic.version = 11 : i64} {
  func.func @_triplet_prcc_kernel(%arg0: i32, %arg1: memref<128x128xbf16, #tpu.memory_space<vmem>>, %arg2: memref<128x128xbf16, #tpu.memory_space<vmem>>, %arg3: memref<128x1xf32, #tpu.memory_space<vmem>>, %arg4: memref<1x128xf32, #tpu.memory_space<vmem>>, %arg5: memref<128x1xi32, #tpu.memory_space<vmem>>, %arg6: memref<1x128xi32, #tpu.memory_space<vmem>>, %arg7: memref<128x1xi32, #tpu.memory_space<vmem>>, %arg8: memref<1x128xi32, #tpu.memory_space<vmem>>, %arg9: memref<1x128xi32, #tpu.memory_space<vmem>>, %arg10: memref<1x1x1xf32, #tpu.memory_space<vmem>>) attributes {dimension_semantics = [#tpu.dimension_semantics<parallel>], iteration_bounds = array<i64: 1>, scalar_prefetch = 0 : i64, scratch_operands = 0 : i64, tpu.core_type = #tpu.core_type<tc>, window_params = [{transform_indices = @transform_0, window_bounds = array<i64: 128, 128>}, {pipeline_mode = #tpu.pipeline_mode<synchronous>, transform_indices = @transform_1, window_bounds = array<i64: 128, 128>}, {transform_indices = @transform_2, window_bounds = array<i64: 128, 1>}, {pipeline_mode = #tpu.pipeline_mode<synchronous>, transform_indices = @transform_3, window_bounds = array<i64: 1, 128>}, {transform_indices = @transform_4, window_bounds = array<i64: 128, 1>}, {pipeline_mode = #tpu.pipeline_mode<synchronous>, transform_indices = @transform_5, window_bounds = array<i64: 1, 128>}, {transform_indices = @transform_6, window_bounds = array<i64: 128, 1>}, {pipeline_mode = #tpu.pipeline_mode<synchronous>, transform_indices = @transform_7, window_bounds = array<i64: 1, 128>}, {pipeline_mode = #tpu.pipeline_mode<synchronous>, transform_indices = @transform_8, window_bounds = array<i64: 1, 128>}, {transform_indices = @transform_9, window_bounds = array<i64: 1, 1, 1>}]} {
    %c0 = arith.constant 0 : index
    %c0_0 = arith.constant 0 : index
    %0 = vector.load %arg1[%c0, %c0_0] : memref<128x128xbf16, #tpu.memory_space<vmem>>, vector<128x128xbf16>
    %c0_1 = arith.constant 0 : index
    %c0_2 = arith.constant 0 : index
    %1 = vector.load %arg2[%c0_1, %c0_2] : memref<128x128xbf16, #tpu.memory_space<vmem>>, vector<128x128xbf16>
    %cst = arith.constant dense<0.000000e+00> : vector<128x128xf32>
    %2 = tpu.matmul %0, %1, %cst {dimension_numbers = #tpu.dot_dimension_numbers<[1], [0], [0], [1], [0, 0, 1, 1], [], []>} : vector<128x128xbf16>, vector<128x128xbf16>, vector<128x128xf32> -> vector<128x128xf32>
    %c0_3 = arith.constant 0 : index
    %c0_4 = arith.constant 0 : index
    %3 = vector.load %arg3[%c0_3, %c0_4] : memref<128x1xf32, #tpu.memory_space<vmem>>, vector<128x1xf32>
    %c0_5 = arith.constant 0 : index
    %c0_6 = arith.constant 0 : index
    %4 = vector.load %arg4[%c0_5, %c0_6] : memref<1x128xf32, #tpu.memory_space<vmem>>, vector<1x128xf32>
    %5 = vector.broadcast %3 : vector<128x1xf32> to vector<128x128xf32>
    %6 = vector.broadcast %4 : vector<1x128xf32> to vector<128x128xf32>
    %7 = arith.addf %5, %6 : vector<128x128xf32>
    %cst_7 = arith.constant 2.000000e+00 : f32
    %8 = vector.broadcast %cst_7 : f32 to vector<128x128xf32>
    %9 = arith.mulf %8, %2 : vector<128x128xf32>
    %10 = arith.subf %7, %9 : vector<128x128xf32>
    %c0_8 = arith.constant 0 : index
    %c0_9 = arith.constant 0 : index
    %11 = vector.load %arg5[%c0_8, %c0_9] : memref<128x1xi32, #tpu.memory_space<vmem>>, vector<128x1xi32>
    %c0_10 = arith.constant 0 : index
    %c0_11 = arith.constant 0 : index
    %12 = vector.load %arg6[%c0_10, %c0_11] : memref<1x128xi32, #tpu.memory_space<vmem>>, vector<1x128xi32>
    %13 = vector.broadcast %11 : vector<128x1xi32> to vector<128x128xi32>
    %14 = vector.broadcast %12 : vector<1x128xi32> to vector<128x128xi32>
    %15 = arith.cmpi eq, %13, %14 : vector<128x128xi32>
    %c0_12 = arith.constant 0 : index
    %c0_13 = arith.constant 0 : index
    %16 = vector.load %arg7[%c0_12, %c0_13] : memref<128x1xi32, #tpu.memory_space<vmem>>, vector<128x1xi32>
    %c0_14 = arith.constant 0 : index
    %c0_15 = arith.constant 0 : index
    %17 = vector.load %arg8[%c0_14, %c0_15] : memref<1x128xi32, #tpu.memory_space<vmem>>, vector<1x128xi32>
    %18 = vector.broadcast %16 : vector<128x1xi32> to vector<128x128xi32>
    %19 = vector.broadcast %17 : vector<1x128xi32> to vector<128x128xi32>
    %20 = arith.muli %18, %19 : vector<128x128xi32>
    %c3_i32 = arith.constant 3 : i32
    %21 = vector.broadcast %c3_i32 : i32 to vector<128x128xi32>
    %22 = arith.cmpi eq, %20, %21 : vector<128x128xi32>
    %c6_i32 = arith.constant 6 : i32
    %23 = vector.broadcast %c6_i32 : i32 to vector<128x128xi32>
    %24 = arith.cmpi eq, %20, %23 : vector<128x128xi32>
    %25 = arith.ori %22, %24 : vector<128x128xi1>
    %26 = arith.andi %15, %25 : vector<128x128xi1>
    %cst_16 = arith.constant dense<true> : vector<128x128xi1>
    %27 = arith.xori %15, %cst_16 : vector<128x128xi1>
    %c0_17 = arith.constant 0 : index
    %c0_18 = arith.constant 0 : index
    %28 = vector.load %arg9[%c0_17, %c0_18] : memref<1x128xi32, #tpu.memory_space<vmem>>, vector<1x128xi32>
    %c0_i32 = arith.constant 0 : i32
    %29 = vector.broadcast %c0_i32 : i32 to vector<1x128xi32>
    %30 = arith.cmpi ne, %28, %29 : vector<1x128xi32>
    %31 = vector.broadcast %30 : vector<1x128xi1> to vector<128x128xi1>
    %32 = arith.andi %27, %31 : vector<128x128xi1>
    %cst_19 = arith.constant 0x7F800000 : f32
    %33 = vector.broadcast %cst_19 : f32 to vector<128x128xf32>
    %34 = arith.select %32, %10, %33 : vector<128x128xi1>, vector<128x128xf32>
    %cst_20 = arith.constant dense<0x7F800000> : vector<128xf32>
    %35 = vector.multi_reduction <minimumf>, %34, %cst_20 [1] : vector<128x128xf32> to vector<128xf32>
    %36 = vector.shape_cast %35 : vector<128xf32> to vector<128x1xf32>
    %cst_21 = arith.constant 9.99999996E-13 : f32
    %37 = vector.broadcast %cst_21 : f32 to vector<128x1xf32>
    %38 = arith.maximumf %36, %37 : vector<128x1xf32>
    %39 = math.sqrt %38 : vector<128x1xf32>
    %cst_22 = arith.constant 9.99999996E-13 : f32
    %40 = vector.broadcast %cst_22 : f32 to vector<128x128xf32>
    %41 = arith.maximumf %10, %40 : vector<128x128xf32>
    %42 = math.sqrt %41 : vector<128x128xf32>
    %43 = vector.broadcast %39 : vector<128x1xf32> to vector<128x128xf32>
    %44 = arith.subf %42, %43 : vector<128x128xf32>
    %cst_23 = arith.constant 3.000000e-01 : f32
    %45 = vector.broadcast %cst_23 : f32 to vector<128x128xf32>
    %46 = arith.addf %44, %45 : vector<128x128xf32>
    %cst_24 = arith.constant 0.000000e+00 : f32
    %47 = vector.broadcast %cst_24 : f32 to vector<128x128xf32>
    %48 = arith.maximumf %46, %47 : vector<128x128xf32>
    %cst_25 = arith.constant 0.000000e+00 : f32
    %49 = vector.broadcast %cst_25 : f32 to vector<128x128xf32>
    %50 = arith.select %26, %48, %49 : vector<128x128xi1>, vector<128x128xf32>
    %cst_26 = arith.constant dense<0.000000e+00> : vector<128xf32>
    %51 = vector.multi_reduction <add>, %50, %cst_26 [1] : vector<128x128xf32> to vector<128xf32>
    %52 = vector.shape_cast %51 : vector<128xf32> to vector<128x1xf32>
    %cst_27 = arith.constant dense<0.000000e+00> : vector<1xf32>
    %53 = vector.multi_reduction <add>, %52, %cst_27 [0] : vector<128x1xf32> to vector<1xf32>
    %54 = vector.shape_cast %53 : vector<1xf32> to vector<1x1xf32>
    %55 = vector.shape_cast %54 : vector<1x1xf32> to vector<1x1x1xf32>
    %c0_28 = arith.constant 0 : index
    %c0_29 = arith.constant 0 : index
    %c0_30 = arith.constant 0 : index
    %56 = vector.load %arg10[%c0_28, %c0_29, %c0_30] : memref<1x1x1xf32, #tpu.memory_space<vmem>>, vector<1x1x1xf32>
    tpu.vector_store %arg10[%c0_28, %c0_29, %c0_30], %55 {strides = array<i32>} : memref<1x1x1xf32, #tpu.memory_space<vmem>>, vector<1x1x1xf32>,
    return
  }
  func.func @transform_0(%arg0: i32) -> (i32, i32) {
    %c0_i32 = arith.constant 0 : i32
    %c0_i32_0 = arith.constant 0 : i32
    return %arg0, %c0_i32 : i32, i32
  }
  func.func @transform_1(%arg0: i32) -> (i32, i32) {
    %c0_i32 = arith.constant 0 : i32
    %c0_i32_0 = arith.constant 0 : i32
    %c0_i32_1 = arith.constant 0 : i32
    return %c0_i32, %c0_i32_0 : i32, i32
  }
  func.func @transform_2(%arg0: i32) -> (i32, i32) {
    %c0_i32 = arith.constant 0 : i32
    %c0_i32_0 = arith.constant 0 : i32
    return %arg0, %c0_i32 : i32, i32
  }
  func.func @transform_3(%arg0: i32) -> (i32, i32) {
    %c0_i32 = arith.constant 0 : i32
    %c0_i32_0 = arith.constant 0 : i32
    %c0_i32_1 = arith.constant 0 : i32
    return %c0_i32, %c0_i32_0 : i32, i32
  }
  func.func @transform_4(%arg0: i32) -> (i32, i32) {
    %c0_i32 = arith.constant 0 : i32
    %c0_i32_0 = arith.constant 0 : i32
    return %arg0, %c0_i32 : i32, i32
  }
  func.func @transform_5(%arg0: i32) -> (i32, i32) {
    %c0_i32 = arith.constant 0 : i32
    %c0_i32_0 = arith.constant 0 : i32
    %c0_i32_1 = arith.constant 0 : i32
    return %c0_i32, %c0_i32_0 : i32, i32
  }
  func.func @transform_6(%arg0: i32) -> (i32, i32) {
    %c0_i32 = arith.constant 0 : i32
    %c0_i32_0 = arith.constant 0 : i32
    return %arg0, %c0_i32 : i32, i32
  }
  func.func @transform_7(%arg0: i32) -> (i32, i32) {
    %c0_i32 = arith.constant 0 : i32
    %c0_i32_0 = arith.constant 0 : i32
    %c0_i32_1 = arith.constant 0 : i32
    return %c0_i32, %c0_i32_0 : i32, i32
  }
  func.func @transform_8(%arg0: i32) -> (i32, i32) {
    %c0_i32 = arith.constant 0 : i32
    %c0_i32_0 = arith.constant 0 : i32
    %c0_i32_1 = arith.constant 0 : i32
    return %c0_i32, %c0_i32_0 : i32, i32
  }
  func.func @transform_9(%arg0: i32) -> (i32, i32, i32) {
    %c0_i32 = arith.constant 0 : i32
    %c0_i32_0 = arith.constant 0 : i32
    %c0_i32_1 = arith.constant 0 : i32
    return %arg0, %c0_i32, %c0_i32_0 : i32, i32, i32
  }
}

</mosaic_0001>

<bundles_post_ra>
// kernel: tpu_custom_call.1
= control target key start
LH: loop header
LB: loop body
LE: loop exit
PB: predicated region body
PF: predicated region fallthrough
CT: control target
= control target key end

     0   :  { %v1313_v2 = vmov 0   ;;  %s2561_s0 = inlined_call_operand.vmem [shape: bf16[128,128], index: 0, kind: input, shape index: {}]   ;;  %s2562_s1 = inlined_call_operand.vmem [shape: bf16[128,128], index: 1, kind: input, shape index: {}]   ;;  %s2563_s2 = inlined_call_operand.vmem [shape: f32[128,1], index: 2, kind: input, shape index: {}]   ;;  %s2564_s3 = inlined_call_operand.vmem [shape: f32[1,128], index: 3, kind: input, shape index: {}]   ;;  %s2565_s4 = inlined_call_operand.vmem [shape: s32[128,1], index: 4, kind: input, shape index: {}]   ;;  %s2566_s5 = inlined_call_operand.vmem [shape: s32[1,128], index: 5, kind: input, shape index: {}]   ;;  %s2567_s6 = inlined_call_operand.vmem [shape: s32[128,1], index: 6, kind: input, shape index: {}]   ;;  %s2568_s7 = inlined_call_operand.vmem [shape: s32[1,128], index: 7, kind: input, shape index: {}]   ;;  %s2569_s8 = inlined_call_operand.vmem [shape: s32[1,128], index: 8, kind: input, shape index: {}]   ;;  %s2570_s9 = inlined_call_operand.hbm [shape: f32[1,1,1], index: 9, kind: output, shape index: {}]  }
   0x1   :  { %v410_v0 = vld [vmem:[%s2565_s4] sm:$0xff]  ;;  %1208 = vset.pattern.permute.xlu1 %v1313_v2  ;;  %1207 = vset.pattern.permute.xlu0 %v1313_v2  ;;  %v411_v4 = vld [vmem:[%s2565_s4 + $0x8] sm:$0xff]  ;;  %v1211_v7 = vld [vmem:[%s2562_s1 + $0x10] sm:$0xff]  }
   0x2   :  { %v259_v1 = vld [vmem:[%s2563_s2] sm:$0xff]  ;;  %428 = vperm.xlu1 %1208, %v410_v0   ;;  %v260_v5 = vld [vmem:[%s2563_s2 + $0x8] sm:$0xff]  ;;  %v412_v8 = vld [vmem:[%s2565_s4 + $0x10] sm:$0xff] }
   0x3   :  { %v1209_v3 = vld [vmem:[%s2562_s1] sm:$0xff]   ;;  %278 = vperm.xlu0 %1207, %v259_v1   ;;  %v1210_v6 = vld [vmem:[%s2562_s1 + $0x8] sm:$0xff]   ;;  %v261_v9 = vld [vmem:[%s2563_s2 + $0x10] sm:$0xff] }
   0x4   :  { %1156 = vmatprep.subr.bf16.mxu0 %v1209_v3  ;;  %1188 = vmatprep.subr.bf16.mxu1 %v1209_v3  ;;  %v1212_v10 = vld [vmem:[%s2562_s1 + $0x18] sm:$0xff]   ;;  %v414_v13 = vld [vmem:[%s2565_s4 + $0x20] sm:$0xff]  ;;  %v1214_v18 = vld [vmem:[%s2562_s1 + $0x28] sm:$0xff]  }
   0x5   :  { %1157 = vmatpush3.bf16.msra.mxu0 %v1209_v3  ;;  %1196 = vmatpush3.bf16.msra.mxu1 %v1209_v3  ;;  %v413_v11 = vld [vmem:[%s2565_s4 + $0x18] sm:$0xff]  ;;  %v1213_v14 = vld [vmem:[%s2562_s1 + $0x20] sm:$0xff]   ;;  %v415_v19 = vld [vmem:[%s2565_s4 + $0x28] sm:$0xff] }
   0x6   :  { %1158 = vmatprep.subr.bf16.mxu0 %v1210_v6  ;;  %1189 = vmatprep.subr.bf16.mxu1 %v1210_v6  ;;  %v262_v12 = vld [vmem:[%s2563_s2 + $0x18] sm:$0xff]  ;;  %v263_v15 = vld [vmem:[%s2563_s2 + $0x20] sm:$0xff]  ;;  %v264_v20 = vld [vmem:[%s2563_s2 + $0x28] sm:$0xff] }
   0x7   :  { %431 = vperm.xlu1 %1208, %v411_v4   ;;  %283 = vperm.xlu0 %1207, %v260_v5   ;;  %v1217_v16 = vld [vmem:[%s2561_s0] sm:$0xff]   ;;  %v1215_v21 = vld [vmem:[%s2562_s1 + $0x30] sm:$0xff]   ;;  %v1216_v24 = vld [vmem:[%s2562_s1 + $0x38] sm:$0xff]  }
   0x8   :  { %v1218_v17 = vld [vmem:[%s2561_s0 + $0x20] sm:$0xff]   ;;  %1172 = vmatprep.mubr.bf16.mxu0 %v1217_v16  ;;  %v416_v22 = vld [vmem:[%s2565_s4 + $0x30] sm:$0xff]  ;;  %v417_v25 = vld [vmem:[%s2565_s4 + $0x38] sm:$0xff] }
   0x9   :  { %1159 = vmatpush3.bf16.msra.mxu0 %v1210_v6  ;;  %1197 = vmatpush3.bf16.msra.mxu1 %v1210_v6  ;;  %v265_v23 = vld [vmem:[%s2563_s2 + $0x30] sm:$0xff]  ;;  %v266_v26 = vld [vmem:[%s2563_s2 + $0x38] sm:$0xff]  ;;  %v418_v27 = vld [vmem:[%s2565_s4 + $0x40] sm:$0xff] }
   0xa   :  { %1160 = vmatprep.subr.bf16.mxu0 %v1211_v7  ;;  %1190 = vmatprep.subr.bf16.mxu1 %v1211_v7  ;;  %v267_v28 = vld [vmem:[%s2563_s2 + $0x40] sm:$0xff]  ;;  %v1219_v29 = vld [vmem:[%s2561_s0 + $0x8] sm:$0xff]  }
   0xb   :  { %434 = vperm.xlu1 %1208, %v412_v8   ;;  %288 = vperm.xlu0 %1207, %v261_v9   ;;  %v1220_v30 = vld [vmem:[%s2561_s0 + $0x28] sm:$0xff]  }
   0xc   :  { %1180 = vmatprep.mubr.bf16.mxu1 %v1218_v17 }
   0xd   :  { %1161 = vmatpush3.bf16.msra.mxu0 %v1211_v7  ;;  %1198 = vmatpush3.bf16.msra.mxu1 %v1211_v7 }
   0xe   :  { %1162 = vmatprep.subr.bf16.mxu0 %v1212_v10  ;;  %1191 = vmatprep.subr.bf16.mxu1 %v1212_v10 }
   0xf   :  { %437 = vperm.xlu1 %1208, %v413_v11   ;;  %293 = vperm.xlu0 %1207, %v262_v12  }
  0x11   :  { %1163 = vmatpush3.bf16.msra.mxu0 %v1212_v10  ;;  %1199 = vmatpush3.bf16.msra.mxu1 %v1212_v10 }
  0x12   :  { %1164 = vmatprep.subr.bf16.mxu0 %v1213_v14  ;;  %1192 = vmatprep.subr.bf16.mxu1 %v1213_v14 }
  0x13   :  { %440 = vperm.xlu1 %1208, %v414_v13   ;;  %298 = vperm.xlu0 %1207, %v263_v15  }
  0x15   :  { %1165 = vmatpush3.bf16.msra.mxu0 %v1213_v14  ;;  %1200 = vmatpush3.bf16.msra.mxu1 %v1213_v14 }
  0x16   :  { %1166 = vmatprep.subr.bf16.mxu0 %v1214_v18  ;;  %1193 = vmatprep.subr.bf16.mxu1 %v1214_v18 }
  0x17   :  { %443 = vperm.xlu1 %1208, %v415_v19   ;;  %303 = vperm.xlu0 %1207, %v264_v20  }
  0x19   :  { %1167 = vmatpush3.bf16.msra.mxu0 %v1214_v18  ;;  %1201 = vmatpush3.bf16.msra.mxu1 %v1214_v18 }
  0x1a   :  { %1168 = vmatprep.subr.bf16.mxu0 %v1215_v21  ;;  %1194 = vmatprep.subr.bf16.mxu1 %v1215_v21 }
  0x1b   :  { %446 = vperm.xlu1 %1208, %v416_v22   ;;  %308 = vperm.xlu0 %1207, %v265_v23  }
  0x1d   :  { %1169 = vmatpush3.bf16.msra.mxu0 %v1215_v21  ;;  %1202 = vmatpush3.bf16.msra.mxu1 %v1215_v21 }
  0x1e   :  { %1170 = vmatprep.subr.bf16.mxu0 %v1216_v24  ;;  %1195 = vmatprep.subr.bf16.mxu1 %v1216_v24 }
  0x1f   :  { %449 = vperm.xlu1 %1208, %v417_v25   ;;  %313 = vperm.xlu0 %1207, %v266_v26  }
  0x20   :  { %14 = vsyncpa [#allocation3], 0  ;;  %v1221_v31 = vld [vmem:[%s2561_s0 + $0x10] sm:$0xff]   ;;  %v419_v33 = vld [vmem:[%s2565_s4 + $0x48] sm:$0xff]  ;;  %v663_v13 = vlaneseq  ;;  %vm1314_vm3 = vmmov 1  }
  0x21   :  { %1171 = vmatpush3.bf16.msra.mxu0 %v1216_v24  ;;  %1203 = vmatpush3.bf16.msra.mxu1 %v1216_v24  ;;  %v1222_v32 = vld [vmem:[%s2561_s0 + $0x30] sm:$0xff]   ;;  %v268_v34 = vld [vmem:[%s2563_s2 + $0x48] sm:$0xff]  ;;  %v1223_v37 = vld [vmem:[%s2561_s0 + $0x18] sm:$0xff]  }
  0x22   :  { %v420_v35 = vld [vmem:[%s2565_s4 + $0x50] sm:$0xff]  ;;  %v1224_v38 = vld [vmem:[%s2561_s0 + $0x38] sm:$0xff]   ;;  %v422_v41 = vld [vmem:[%s2565_s4 + $0x60] sm:$0xff]  ;;  %v664_v17 = vshrl.u32 %v663_v13, 7 }
  0x23   :  { %452 = vperm.xlu1 %1208, %v418_v27   ;;  %318 = vperm.xlu0 %1207, %v267_v28   ;;  %v269_v36 = vld [vmem:[%s2563_s2 + $0x50] sm:$0xff]  ;;  %v421_v39 = vld [vmem:[%s2565_s4 + $0x58] sm:$0xff]  ;;  %v271_v42 = vld [vmem:[%s2563_s2 + $0x60] sm:$0xff] }
  0x24   :  { %1173 = vmatmul.mubr.bf16.vlgmr.msra.gmra.mrb[0].mxu0 %v1219_v29  ;;  %1181 = vmatmul.mubr.bf16.vlgmr.msra.gmra.mrb[0].mxu1 %v1220_v30  ;;  %v270_v40 = vld [vmem:[%s2563_s2 + $0x58] sm:$0xff]  ;;  %v423_v43 = vld [vmem:[%s2565_s4 + $0x68] sm:$0xff]  ;;  %v424_v45 = vld [vmem:[%s2565_s4 + $0x70] sm:$0xff]  ;;  %v665_v20 = vsub.s32 0, %v664_v17 }
  0x25   :  { %1176 = vmatprep.mubr.bf16.mxu0 %v1221_v31  ;;  %1184 = vmatprep.mubr.bf16.mxu1 %v1222_v32  ;;  %v272_v44 = vld [vmem:[%s2563_s2 + $0x68] sm:$0xff]  ;;  %v273_v46 = vld [vmem:[%s2563_s2 + $0x70] sm:$0xff]  ;;  %v425_v47 = vld [vmem:[%s2565_s4 + $0x78] sm:$0xff] }
  0x26   :  { %v274_v48 = vld [vmem:[%s2563_s2 + $0x78] sm:$0xff]  ;;  %v495_v49 = vld [vmem:[%s2567_s6] sm:$0xff]  ;;  %v496_v50 = vld [vmem:[%s2567_s6 + $0x8] sm:$0xff] }
  0x27   :  { %455 = vperm.xlu1 %1208, %v419_v33   ;;  %323 = vperm.xlu0 %1207, %v268_v34   ;;  %v498_v51 = vld [vmem:[%s2567_s6 + $0x18] sm:$0xff]  ;;  %v497_v52 = vld [vmem:[%s2567_s6 + $0x10] sm:$0xff]  ;;  %v500_v53 = vld [vmem:[%s2567_s6 + $0x28] sm:$0xff] }
  0x28   :  { %v499_v54 = vld [vmem:[%s2567_s6 + $0x20] sm:$0xff]  ;;  %v501_v55 = vld [vmem:[%s2567_s6 + $0x30] sm:$0xff]  ;;  %v502_v57 = vld [vmem:[%s2567_s6 + $0x38] sm:$0xff] }
  0x29   :  { %v503_v56 = vld [vmem:[%s2567_s6 + $0x40] sm:$0xff]  ;;  %v505_v58 = vld [vmem:[%s2567_s6 + $0x50] sm:$0xff]  ;;  %v504_v59 = vld [vmem:[%s2567_s6 + $0x48] sm:$0xff] }
  0x2a   :  { %v660_v16 = vld [vmem:[%s2569_s8] sm:$0x1] }
  0x2b   :  { %458 = vperm.xlu1 %1208, %v420_v35   ;;  %328 = vperm.xlu0 %1207, %v269_v36   ;;  %vm661_vm0 = vcmp.ne.s32.totalorder %v660_v16, 0  ;;  %v1592_v27 = vld [vmem:[%s2566_s5] ss:$0 sm:$0xff]  ;;  %v508_v35 = vld [vmem:[%s2567_s6 + $0x68] sm:$0xff] }
  0x2c   :  { %1177 = vmatmul.mubr.bf16.gmra.mrb[4].mxu0 %v1223_v37  ;;  %1185 = vmatmul.mubr.bf16.gmra.mrb[4].mxu1 %v1224_v38  ;;  %v662_v23 = vsel %vm661_vm0, 1, %v1313_v2  ;;  %v1597_v28 = vld [vmem:[%s2564_s3] ss:$0 sm:$0xff] }
  0x2d   :  { %v1583_v24 = vrot.slane %v662_v23, %v665_v20  ;;  %v507_v31 = vld [vmem:[%s2567_s6 + $0x60] sm:$0xff] }
  0x2f   :  { %461 = vperm.xlu1 %1208, %v421_v39   ;;  %333 = vperm.xlu0 %1207, %v270_v40   ;;  %vm667_vm1 = vcmp.eq.s32.totalorder %v1583_v24, 1  ;;  %v506_v24 = vld [vmem:[%s2567_s6 + $0x58] sm:$0xff] }
  0x33   :  { %464 = vperm.xlu1 %1208, %v422_v41   ;;  %338 = vperm.xlu0 %1207, %v271_v42  }
  0x37   :  { %467 = vperm.xlu1 %1208, %v423_v43   ;;  %343 = vperm.xlu0 %1207, %v272_v44  }
  0x3b   :  { %470 = vperm.xlu1 %1208, %v424_v45   ;;  %348 = vperm.xlu0 %1207, %v273_v46  }
  0x3f   :  { %473 = vperm.xlu1 %1208, %v425_v47   ;;  %353 = vperm.xlu0 %1207, %v274_v48  }
  0x43   :  { %513 = vperm.xlu1 %1208, %v495_v49   ;;  %516 = vperm.xlu0 %1207, %v496_v50  }
  0x47   :  { %522 = vperm.xlu1 %1208, %v498_v51   ;;  %519 = vperm.xlu0 %1207, %v497_v52  }
  0x4b   :  { %528 = vperm.xlu1 %1208, %v500_v53   ;;  %525 = vperm.xlu0 %1207, %v499_v54  }
  0x4f   :  { %531 = vperm.xlu1 %1208, %v501_v55   ;;  %537 = vperm.xlu0 %1207, %v503_v56  }
  0x53   :  { %534 = vperm.xlu1 %1208, %v502_v57   ;;  %543 = vperm.xlu0 %1207, %v505_v58  }
  0x57   :  { %540 = vperm.xlu1 %1208, %v504_v59  }
  0x81   :  { %v1545_v60 = vpop.permute.xlu1 %428 }
  0x82   :  { %v279_v61 = vpop.permute.xlu0 %278  ;;  %vm2575_vm9 = vcmp.eq.s32.totalorder %v1545_v60, %v1592_v27 }
  0x83   :  { %vm644_vm12 = vmxor %vm2575_vm9, %vm1314_vm3  ;;  %v362_v40 = vadd.f32 %v1597_v28, %v279_v61 }
  0x86   :  { %v1547_v62 = vpop.permute.xlu1 %431  ;;  %v284_v63 = vpop.permute.xlu0 %283 }
  0x87   :  { %vm2574_vm10 = vcmp.eq.s32.totalorder %v1547_v62, %v1592_v27  ;;  %v363_v41 = vadd.f32 %v1597_v28, %v284_v63 }
  0x88   :  { %vm1650_vm14 = vmxor %vm2574_vm10, %vm1314_vm3 }
  0x89   :  { %vm1705_vm9 = vmand %vm1650_vm14, %vm667_vm1 }
  0x8a   :  { %v1549_v0 = vpop.permute.xlu1 %434  ;;  %v289_v1 = vpop.permute.xlu0 %288 }
  0x8b   :  { %vm2580_vm11 = vcmp.eq.s32.totalorder %v1549_v0, %v1592_v27  ;;  %v364_v42 = vadd.f32 %v1597_v28, %v289_v1 }
  0x8c   :  { %vm646_vm15 = vmxor %vm2580_vm11, %vm1314_vm3 }
  0x8e   :  { %v1551_v3 = vpop.permute.xlu1 %437  ;;  %v1553_v4 = vpop.permute.xlu0 %293 }
  0x8f   :  { %vm2573_vm13 = vcmp.eq.s32.totalorder %v1551_v3, %v1592_v27  ;;  %v365_v48 = vadd.f32 %v1597_v28, %v1553_v4 }
  0x90   :  { %vm647_vm0 = vmxor %vm2573_vm13, %vm1314_vm3 }
  0x91   :  { %vm1678_vm13 = vmand %vm646_vm15, %vm667_vm1 }
  0x92   :  { %v1555_v5 = vpop.permute.xlu1 %440  ;;  %v1557_v6 = vpop.permute.xlu0 %298  ;;  %vm1697_vm10 = vmand %vm647_vm0, %vm667_vm1 }
  0x96   :  { %v1559_v7 = vpop.permute.xlu1 %443  ;;  %v1561_v8 = vpop.permute.xlu0 %303 }
  0x97   :  { %vm2579_vm15 = vcmp.eq.s32.totalorder %v1559_v7, %v1592_v27 }
  0x9a   :  { %v1563_v9 = vpop.permute.xlu1 %446  ;;  %v1565_v10 = vpop.permute.xlu0 %308 }
  0x9b   :  { %vm2592_vm14 = vcmp.eq.s32.totalorder %v1563_v9, %v1592_v27 }
  0x9e   :  { %v1567_v11 = vpop.permute.xlu1 %449  ;;  %v1569_v12 = vpop.permute.xlu0 %313 }
  0xa2   :  { %v1571_v14 = vpop.permute.xlu1 %452  ;;  %v319_v15 = vpop.permute.xlu0 %318 }
  0xa3   :  { %v370_v56 = vadd.f32 %v1597_v28, %v319_v15 }
  0xa6   :  { %v1576_v18 = vpop.permute.xlu1 %455  ;;  %v1578_v19 = vpop.permute.xlu0 %323 }
  0xaa   :  { %v1580_v21 = vpop.permute.xlu1 %458  ;;  %v329_v22 = vpop.permute.xlu0 %328 }
  0xab   :  { %v372_v50 = vadd.f32 %v1597_v28, %v329_v22 }
  0xae   :  { %v1585_v25 = vpop.permute.xlu1 %461  ;;  %v1587_v26 = vpop.permute.xlu0 %333 }
  0xaf   :  { %2593 = vst [vmem:[#allocation5_spill] sm:$0xff] %v1585_v25  ;;  %vm2590_vm11 = vcmp.eq.s32.totalorder %v1585_v25, %v1592_v27  ;;  %v373_v39 = vadd.f32 %v1597_v28, %v1587_v26 }
  0xb2   :  { %v1600_v29 = vpop.permute.xlu1 %464  ;;  %v339_v2 = vpop.permute.xlu0 %338 }
  0xb3   :  { %2594 = vst [vmem:[#allocation6_spill] sm:$0xff] %v1600_v29  ;;  %vm2572_vm2 = vcmp.eq.s32.totalorder %v1600_v29, %v1592_v27  ;;  %v1605_v30 = vadd.f32 %v1597_v28, %v339_v2 }
  0xb4   :  { %vm656_vm4 = vmxor %vm2572_vm2, %vm1314_vm3  ;;  %vm2578_vm2 = vcmp.eq.s32.totalorder %v1571_v14, %v1592_v27 }
  0xb5   :  { %vm1613_vm5 = vmand %vm656_vm4, %vm667_vm1  ;;  %vm2576_vm4 = vcmp.eq.s32.totalorder %v1555_v5, %v1592_v27 }
  0xb6   :  { %v1617_v32 = vpop.permute.xlu1 %467  ;;  %v344_v33 = vpop.permute.xlu0 %343  ;;  %vm1726_vm0 = vmxor %vm2578_vm2, %vm1314_vm3 }
  0xb7   :  { %2597 = vst [vmem:[#allocation7_spill] sm:$0xff] %v1617_v32  ;;  %vm2571_vm6 = vcmp.eq.s32.totalorder %v1617_v32, %v1592_v27  ;;  %v1622_v34 = vadd.f32 %v1597_v28, %v344_v33  ;;  %vm1763_vm2 = vmand %vm1726_vm0, %vm667_vm1 }
  0xb8   :  { %vm657_vm7 = vmxor %vm2571_vm6, %vm1314_vm3 }
  0xb9   :  { %vm1630_vm8 = vmand %vm657_vm7, %vm667_vm1  ;;  %vm2577_vm7 = vcmp.eq.s32.totalorder %v1580_v21, %v1592_v27 }
  0xba   :  { %vm1668_vm6 = vmand %vm644_vm12, %vm667_vm1  ;;  %v1674_v38 = vpop.permute.xlu1 %470 }
  0xbb   :  { %2604 = vst [vmem:[#allocation8_spill] sm:$0xff] %v1674_v38  ;;  %vm1689_vm12 = vmxor %vm2576_vm4, %vm1314_vm3 }
  0xbc   :  { %vm1715_vm4 = vmxor %vm2577_vm7, %vm1314_vm3 }
  0xbd   :  { %vm1735_vm7 = vmxor %vm2579_vm15, %vm1314_vm3 }
  0xbe   :  { %vm678_vm15 = vmand %vm1715_vm4, %vm667_vm1 }
  0xbf   :  { %vm1771_vm4 = vmxor %vm2592_vm14, %vm1314_vm3 }
  0xc0   :  { %vm1829_vm0 = vmand %vm1689_vm12, %vm667_vm1  ;;  %vm2591_vm12 = vcmp.eq.s32.totalorder %v1567_v11, %v1592_v27 }
  0xf7   :  { %v1174_v44 = vpop.f32.mrb[0].mxu0  ;;  %v1182_v45 = vpop.f32.mrb[0].mxu1 }
  0xf8   :  { %v380_v51 = vmul.f32 2.0, %v1174_v44  ;;  %v388_v52 = vmul.f32 2.0, %v1182_v45  ;;  %v196_v53 = vpop.f32.mrb[1].mxu0  ;;  %v228_v54 = vpop.f32.mrb[1].mxu1 }
  0xf9   :  { %v378_v57 = vmul.f32 2.0, %v196_v53  ;;  %v386_v58 = vmul.f32 2.0, %v228_v54  ;;  %v1175_v59 = vpop.f32.mrb[2].mxu0  ;;  %v1183_v61 = vpop.f32.mrb[2].mxu1  ;;  %v367_v54 = vadd.f32 %v1597_v28, %v1561_v8  ;;  %v510_v8 = vld [vmem:[%s2567_s6 + $0x78] sm:$0xff] }
  0xfa   :  { %v381_v1 = vmul.f32 2.0, %v1175_v59  ;;  %v199_v4 = vpop.f32.mrb[3].mxu0  ;;  %v231_v13 = vpop.f32.mrb[3].mxu1  ;;  %v1741_v16 = vsub.f32 %v372_v50, %v388_v52  ;;  %v1743_v15 = vsub.f32 %v364_v42, %v380_v51  ;;  %v389_v17 = vmul.f32 2.0, %v1183_v61 }
  0xfb   :  { %v379_v20 = vmul.f32 2.0, %v199_v4  ;;  %v1749_v22 = vsub.f32 %v370_v56, %v386_v58  ;;  %v1751_v23 = vsub.f32 %v362_v40, %v378_v57  ;;  %v387_v2 = vmul.f32 2.0, %v231_v13  ;;  %v349_v44 = vpop.permute.xlu0 %348  ;;  %v1795_v52 = vpop.permute.xlu1 %473 }
  0xfc   :  { %v694_v33 = vsel %vm678_vm15, %v1741_v16, inf  ;;  %v686_v36 = vsel %vm1678_vm13, %v1743_v15, inf  ;;  %v366_v50 = vadd.f32 %v1597_v28, %v1557_v6  ;;  %vm2623_vm13 = vcmp.eq.s32.totalorder %v1576_v18, %v1592_v27  ;;  %2626 = vst [vmem:[#allocation9_spill] sm:$0xff] %v1795_v52 }
  0xfd   :  { %720 = vmin.xlane.f32.xlu1 %v694_v33  ;;  %704 = vmin.xlane.f32.xlu0 %v686_v36  ;;  %v692_v45 = vsel %vm1763_vm2, %v1749_v22, inf  ;;  %v684_v49 = vsel %vm1668_vm6, %v1751_v23, inf  ;;  %vm1789_vm15 = vmxor %vm2623_vm13, %vm1314_vm3  ;;  %v371_v51 = vadd.f32 %v1597_v28, %v1578_v19  ;;  %v1797_v53 = vsub.f32 %v365_v48, %v381_v1 }
  0xfe   :  { %v1799_v37 = vsub.f32 %v363_v41, %v379_v20  ;;  %vm1805_vm2 = vmand %vm1735_vm7, %vm667_vm1  ;;  %v368_v19 = vadd.f32 %v1597_v28, %v1565_v10  ;;  %vm2589_vm7 = vcmp.eq.s32.totalorder %v1674_v38, %v1592_v27  ;;  %v1823_v56 = vsub.f32 %v373_v39, %v389_v17 }
  0xff   :  { %vm1817_vm6 = vmxor %vm2590_vm11, %vm1314_vm3  ;;  %v1178_v48 = vpop.f32.mrb[4].mxu0  ;;  %v1186_v55 = vpop.f32.mrb[4].mxu1  ;;  %v687_v59 = vsel %vm1697_vm10, %v1797_v53, inf  ;;  %v1847_v63 = vsub.f32 %v371_v51, %v387_v2  ;;  %vm2586_vm10 = vcmp.eq.s32.totalorder %v1795_v52, %v1592_v27  ;;  %v1968_v39 = vmax.f32 %v1743_v15, 1e-12 }
 0x100   :  { %v384_v10 = vmul.f32 2.0, %v1178_v48  ;;  %v212_v57 = vpop.f32.mrb[5].mxu0  ;;  %v244_v58 = vpop.f32.mrb[5].mxu1  ;;  %v685_v61 = vsel %vm1705_vm9, %v1799_v37, inf  ;;  %vm1843_vm13 = vmand %vm1771_vm4, %vm667_vm1  ;;  %v392_v46 = vmul.f32 2.0, %v1186_v55  ;;  %v369_v48 = vadd.f32 %v1597_v28, %v1569_v12 }
 0x101   :  { %v382_v1 = vmul.f32 2.0, %v212_v57  ;;  %716 = vmin.xlane.f32.xlu1 %v692_v45  ;;  %v1187_v47 = vpop.f32.mrb[6].mxu1  ;;  %700 = vmin.xlane.f32.xlu0 %v684_v49  ;;  %v1179_v4 = vpop.f32.mrb[6].mxu0  ;;  %vm1857_vm9 = vmand %vm1789_vm15, %vm667_vm1  ;;  %v390_v17 = vmul.f32 2.0, %v244_v58  ;;  %v376_v45 = vadd.f32 %v1597_v28, %v349_v44 }
 0x102   :  { %v393_v20 = vmul.f32 2.0, %v1187_v47  ;;  %v385_v2 = vmul.f32 2.0, %v1179_v4  ;;  %v215_v33 = vpop.f32.mrb[7].mxu0  ;;  %v247_v36 = vpop.f32.mrb[7].mxu1  ;;  %vm1865_vm4 = vmand %vm1817_vm6, %vm667_vm1  ;;  %v1869_v40 = vsub.f32 %v368_v19, %v384_v10  ;;  %v693_v10 = vsel %vm1857_vm9, %v1847_v63, inf }
 0x103   :  { %vm1875_vm15 = vmxor %vm2589_vm7, %vm1314_vm3  ;;  %v354_v49 = vpop.permute.xlu0 %353  ;;  %v383_v26 = vmul.f32 2.0, %v215_v33  ;;  %v391_v51 = vmul.f32 2.0, %v247_v36  ;;  %v695_v41 = vsel %vm1865_vm4, %v1823_v56, inf  ;;  %v398_v47 = vsub.f32 %v366_v50, %v382_v1  ;;  %v509_v1 = vld [vmem:[%s2567_s6 + $0x70] sm:$0xff] }
 0x104   :  { %vm1887_vm6 = vmxor %vm2591_vm12, %vm1314_vm3  ;;  %v377_v44 = vadd.f32 %v1597_v28, %v354_v49  ;;  %v690_v55 = vsel %vm1843_vm13, %v1869_v40, inf  ;;  %v1913_v28 = vsub.f32 %v376_v45, %v392_v46  ;;  %v401_v4 = vsub.f32 %v369_v48, %v385_v2 }
 0x105   :  { %vm1904_vm4 = vmxor %vm2586_vm10, %vm1314_vm3  ;;  %v1908_v58 = vsub.f32 %v367_v54, %v383_v26  ;;  %v1911_v12 = vsub.f32 %v1622_v34, %v391_v51  ;;  %706 = vmin.xlane.f32.xlu0 %v687_v59  ;;  %702 = vmin.xlane.f32.xlu1 %v685_v61  ;;  %v1926_v54 = vsub.f32 %v1605_v30, %v390_v17  ;;  %v688_v50 = vsel %vm1829_vm0, %v398_v47, inf  ;;  %v514_v17 = vpop.permute.xlu1 %513 }
 0x106   :  { %vm1919_vm13 = vmand %vm1875_vm15, %vm667_vm1  ;;  %v1923_v13 = vsub.f32 %v377_v44, %v393_v20  ;;  %v860_v36 = vmax.f32 %v1751_v23, 1e-12  ;;  %v1971_v45 = vmax.f32 %v1799_v37, 1e-12  ;;  %v1975_v51 = vmax.f32 %v1797_v53, 1e-12 }
 0x107   :  { %2645 = vst [vmem:[#allocation10_spill] sm:$0xff] %v1911_v12  ;;  %v698_v34 = vsel %vm1919_vm13, %v1913_v28, inf  ;;  %vm675_vm3 = vmand %vm1887_vm6, %vm667_vm1  ;;  %v689_v59 = vsel %vm1805_vm2, %v1908_v58, inf  ;;  %v696_v46 = vsel %vm1613_vm5, %v1926_v54, inf  ;;  %v697_v6 = vsel %vm1630_vm8, %v1911_v12, inf  ;;  %v517_v20 = vpop.permute.xlu0 %516 }
 0x108   :  { %2648 = vst [vmem:[#allocation11_spill] sm:$0xff] %v1923_v13  ;;  %v691_v61 = vsel %vm675_vm3, %v401_v4, inf  ;;  %vm683_vm9 = vmand %vm1904_vm4, %vm667_vm1  ;;  %1225 = vrsqrt.f32 %v860_v36  ;;  %v1981_v23 = vmax.f32 %v1869_v40, 1e-12  ;;  %v1984_v19 = vmax.f32 %v1749_v22, 1e-12 }
 0x109   :  { %722 = vmin.xlane.f32.xlu0 %v695_v41  ;;  %712 = vmin.xlane.f32.xlu1 %v690_v55  ;;  %v699_v30 = vsel %vm683_vm9, %v1923_v13, inf  ;;  %v523_v2 = vpop.permute.xlu1 %522  ;;  %1227 = vrsqrt.f32 %v1968_v39  ;;  %v1978_v41 = vmax.f32 %v398_v47, 1e-12  ;;  %v1989_v37 = vld [vmem:[%s2568_s7] ss:$0 sm:$0xff]  ;;  %vm878_vm1 = vcmp.eq.f32.partialorder %v860_v36, inf }
 0x10a   :  { %1229 = vrsqrt.f32 %v1971_v45  ;;  %v1992_v48 = vmax.f32 %v1741_v16, 1e-12  ;;  %v1995_v44 = vmax.f32 %v401_v4, 1e-12  ;;  %v1999_v55 = vmax.f32 %v1908_v58, 1e-12 }
 0x10b   :  { %v520_v33 = vpop.permute.xlu0 %519  ;;  %1231 = vrsqrt.f32 %v1975_v51  ;;  %v2007_v16 = vmul.u32 %v1989_v37, %v517_v20  ;;  %v2010_v57 = vmul.u32 %v1989_v37, %v523_v2  ;;  %v2017_v47 = vmax.f32 %v1847_v63, 1e-12  ;;  %s1315_s7 = smov [#allocation2]  }
 0x10c   :  { %1233 = vrsqrt.f32 %v1978_v41  ;;  %v2014_v43 = vmul.u32 %v1989_v37, %v520_v33  ;;  %vm892_vm5 = vcmp.eq.f32.partialorder %v1968_v39, inf  ;;  %vm880_vm8 = vcmp.eq.f32.partialorder %v860_v36, 0.0  ;;  %s1113_s26 = sshll.u32 %s1315_s7, 4  ;;  %s1114_s26 = int_to_ptr.vmem [resolvable:$true] %s1113_s26 }
 0x10d   :  { %718 = vmin.xlane.f32.xlu0 %v693_v10  ;;  %728 = vmin.xlane.f32.xlu1 %v698_v34  ;;  %v529_v42 = vpop.permute.xlu1 %528  ;;  %1235 = vrsqrt.f32 %v1981_v23  ;;  %v2003_v10 = vmul.u32 %v1989_v37, %v514_v17  ;;  %v881_v17 = vand.u32 2147483648, %v860_v36  ;;  %v2048_v33 = vmax.f32 %v1823_v56, 1e-12  ;;  %s1289_s0 = scalar_lea.vmem %s1114_s26, 16  ;;  %s1293_s27 = scalar_lea.vmem %s1114_s26, 32 }
 0x10e   :  { %1237 = vrsqrt.f32 %v1984_v19  ;;  %vm885_vm2 = vcmp.eq.f32.partialorder %v1971_v45, inf  ;;  %vm887_vm0 = vcmp.eq.f32.partialorder %v1971_v45, 0.0  ;;  %vm894_vm15 = vcmp.eq.f32.partialorder %v1968_v39, 0.0  ;;  %p1290_p0 = scmp.ne.s32.totalorder %s1114_s26, %s1289_s0  ;;  %p1294_p1 = scmp.lt.s32.totalorder %s1114_s26, %s1114_s26 }
 0x10f   :  { %v526_v49 = vpop.permute.xlu0 %525  ;;  %1239 = vrsqrt.f32 %v1992_v48  ;;  %vm899_vm6 = vcmp.eq.f32.partialorder %v1975_v51, inf  ;;  %vm906_vm4 = vcmp.eq.f32.partialorder %v1978_v41, inf  ;;  %vm920_vm13 = vcmp.eq.f32.partialorder %v1981_v23, inf  ;;  %p1295_p2 = scmp.lt.s32.totalorder %s1293_s27, %s1289_s0 }
 0x110   :  { %1241 = vrsqrt.f32 %v1995_v44  ;;  %vm901_vm3 = vcmp.eq.f32.partialorder %v1975_v51, 0.0  ;;  %vm908_vm9 = vcmp.eq.f32.partialorder %v1978_v41, 0.0  ;;  %vm929_vm10 = vcmp.eq.f32.partialorder %v1995_v44, 0.0 }
 0x111   :  { %708 = vmin.xlane.f32.xlu1 %v688_v50  ;;  %714 = vmin.xlane.f32.xlu0 %v691_v61  ;;  %v532_v26 = vpop.permute.xlu1 %531  ;;  %v2024_v50 = vmul.u32 %v1989_v37, %v526_v49  ;;  %1243 = vrsqrt.f32 %v1999_v55  ;;  %p1296_p3 = por %p1295_p2, %p1294_p1 }
 0x112   :  { %v1226_v40 = vpop.eup %1225  ;;  %1245 = vrsqrt.f32 %v2017_v47 }
 0x113   :  { %v538_v15 = vpop.permute.xlu0 %537  ;;  %v1228_v22 = vpop.eup %1227  ;;  %v877_v4 = vmul.f32 %v1226_v40, %v860_v36  ;;  %p1297_p4 = pnand %p1296_p3, %p1290_p0 }
 0x114   :  { %v1230_v34 = vpop.eup %1229  ;;  %v891_v61 = vmul.f32 %v1228_v22, %v1968_v39  ;;  %v2032_v63 = vmul.u32 %v1989_v37, %v538_v15  ;;  %v888_v15 = vand.u32 2147483648, %v1971_v45 }
 0x115   :  { %730 = vmin.xlane.f32.xlu0 %v699_v30  ;;  %v535_v53 = vpop.permute.xlu1 %534  ;;  %v2029_v30 = vmul.u32 %v1989_v37, %v532_v26 }
 0x116   :  { %v893_v20 = vsel %vm892_vm5, %v1968_v39, %v891_v61  ;;  %vm934_vm5 = vcmp.eq.f32.partialorder %v1984_v19, inf }
 0x117   :  { %v544_v58 = vpop.permute.xlu0 %543  ;;  %vm586_vm11 = vcmp.eq.s32.totalorder %v2029_v30, 3 }
 0x119   :  { %710 = vmin.xlane.f32.xlu0 %v689_v59  ;;  %v2021_v59 = vmul.u32 %v1989_v37, %v529_v42  ;;  %v895_v42 = vand.u32 2147483648, %v1968_v39  ;;  %v909_v39 = vand.u32 2147483648, %v1978_v41 }
 0x11b   :  { %v2059_v22 = vsel %vm894_vm15, %v895_v42, %v893_v20  ;;  %vm927_vm15 = vcmp.eq.f32.partialorder %v1995_v44, inf }
 0x122   :  { %546 = vperm.xlu1 %1208, %v506_v24   ;;  %v2038_v24 = vmul.u32 %v1989_v37, %v544_v58  ;;  %v902_v58 = vand.u32 2147483648, %v1975_v51 }
 0x12f   :  { %549 = vperm.xlu0 %1207, %v507_v31   ;;  %v879_v31 = vsel %vm878_vm1, %v860_v36, %v877_v4  ;;  %vm922_vm1 = vcmp.eq.f32.partialorder %v1981_v23, 0.0 }
 0x130   :  { %v2053_v26 = vsel %vm880_vm8, %v881_v17, %v879_v31  ;;  %v923_v31 = vand.u32 2147483648, %v1981_v23  ;;  %vm936_vm8 = vcmp.eq.f32.partialorder %v1984_v19, 0.0 }
 0x146   :  { %724 = vmin.xlane.f32.xlu1 %v696_v46  ;;  %v541_v46 = vpop.permute.xlu1 %540 }
 0x14e   :  { %726 = vmin.xlane.f32.xlu0 %v697_v6  ;;  %v2035_v6 = vmul.u32 %v1989_v37, %v535_v53 }
 0x157   :  { %552 = vperm.xlu1 %1208, %v508_v35   ;;  %v884_v35 = vmul.f32 %v1230_v34, %v1971_v45 }
 0x159   :  { %v886_v56 = vsel %vm885_vm2, %v1971_v45, %v884_v35  ;;  %v937_v35 = vand.u32 2147483648, %v1984_v19  ;;  %vm948_vm2 = vcmp.eq.f32.partialorder %v1992_v48, inf }
 0x15a   :  { %v2078_v20 = vsel %vm887_vm0, %v888_v15, %v886_v56  ;;  %vm950_vm0 = vcmp.eq.f32.partialorder %v1992_v48, 0.0 }
 0x15b   :  { %558 = vperm.xlu1 %1208, %v510_v8   ;;  %v1232_v8 = vpop.eup %1231 }
 0x15c   :  { %v1234_v2 = vpop.eup %1233  ;;  %v898_v42 = vmul.f32 %v1232_v8, %v1975_v51 }
 0x15d   :  { %v1236_v49 = vpop.eup %1235 }
 0x15e   :  { %v1238_v36 = vpop.eup %1237  ;;  %v919_v32 = vmul.f32 %v1236_v49, %v1981_v23  ;;  %v951_v49 = vand.u32 2147483648, %v1992_v48 }
 0x15f   :  { %v1240_v4 = vpop.eup %1239  ;;  %v933_v38 = vmul.f32 %v1238_v36, %v1984_v19 }
 0x160   :  { %v947_v29 = vmul.f32 %v1240_v4, %v1992_v48 }
 0x164   :  { %555 = vperm.xlu0 %1207, %v509_v1   ;;  %v2044_v1 = vmul.u32 %v1989_v37, %v541_v46  ;;  %v1242_v46 = vpop.eup %1241 }
 0x165   :  { %v1244_v17 = vpop.eup %1243  ;;  %v926_v8 = vmul.f32 %v1242_v46, %v1995_v44  ;;  %v921_v46 = vsel %vm920_vm13, %v1981_v23, %v919_v32  ;;  %v930_v32 = vand.u32 2147483648, %v1995_v44  ;;  %vm941_vm13 = vcmp.eq.f32.partialorder %v2017_v47, inf }
 0x166   :  { %v2094_v15 = vmul.f32 %v1244_v17, %v1999_v55  ;;  %v935_v17 = vsel %vm934_vm5, %v1984_v19, %v933_v38  ;;  %vm580_vm5 = vcmp.eq.s32.totalorder %v2003_v10, 3 }
 0x167   :  { %v928_v12 = vsel %vm927_vm15, %v1995_v44, %v926_v8 }
 0x168   :  { %v2155_v23 = vsel %vm929_vm10, %v930_v32, %v928_v12 }
 0x18a   :  { %v721_v53 = vpop.xlane.xlu1 %720  ;;  %v705_v40 = vpop.xlane.xlu0 %704 }
 0x18b   :  { %v2063_v34 = vmax.f32 %v721_v53, 1e-12  ;;  %v2065_v61 = vmax.f32 %v705_v40, 1e-12  ;;  %v905_v53 = vmul.f32 %v1234_v2, %v1978_v41  ;;  %v1246_v2 = vpop.eup %1245 }
 0x18c   :  { %v940_v25 = vmul.f32 %v1246_v2, %v2017_v47  ;;  %v2140_v2 = vsel %vm922_vm1, %v923_v31, %v921_v46  ;;  %vm602_vm1 = vcmp.eq.s32.totalorder %v2029_v30, 6 }
 0x18d   :  { %1247 = vrsqrt.f32 %v2063_v34  ;;  %v907_v36 = vsel %vm906_vm4, %v1978_v41, %v905_v53  ;;  %vm598_vm4 = vcmp.eq.s32.totalorder %v2014_v43, 6  ;;  %v767_v12 = vand.u32 2147483648, %v2065_v61 }
 0x18e   :  { %1249 = vrsqrt.f32 %v2065_v61  ;;  %v717_v40 = vpop.xlane.xlu1 %716  ;;  %v701_v52 = vpop.xlane.xlu0 %700  ;;  %v2136_v8 = vsel %vm908_vm9, %v909_v39, %v907_v36  ;;  %vm766_vm9 = vcmp.eq.f32.partialorder %v2065_v61, 0.0  ;;  %v2164_v19 = vsel %vm941_vm13, %v2017_v47, %v940_v25 }
 0x18f   :  { %v2087_v13 = vmax.f32 %v717_v40, 1e-12  ;;  %v2089_v45 = vmax.f32 %v701_v52, 1e-12  ;;  %v900_v52 = vsel %vm899_vm6, %v1975_v51, %v898_v42  ;;  %v949_v42 = vsel %vm948_vm2, %v1992_v48, %v947_v29 }
 0x190   :  { %vm582_vm6 = vcmp.eq.s32.totalorder %v2014_v43, 3  ;;  %v2132_v29 = vsel %vm901_vm3, %v902_v58, %v900_v52  ;;  %vm596_vm2 = vcmp.eq.s32.totalorder %v2003_v10, 6  ;;  %v2149_v51 = vsel %vm936_vm8, %v937_v35, %v935_v17 }
 0x191   :  { %1251 = vrsqrt.f32 %v2087_v13  ;;  %v952_v41 = vsel %vm950_vm0, %v951_v49, %v949_v42  ;;  %vm764_vm3 = vcmp.eq.f32.partialorder %v2065_v61, inf  ;;  %vm606_vm8 = vcmp.eq.s32.totalorder %v2038_v24, 6 }
 0x192   :  { %1253 = vrsqrt.f32 %v2089_v45  ;;  %v707_v56 = vpop.xlane.xlu0 %706  ;;  %v703_v4 = vpop.xlane.xlu1 %702  ;;  %vm820_vm10 = vcmp.eq.f32.partialorder %v2063_v34, inf  ;;  %vm822_vm0 = vcmp.eq.f32.partialorder %v2063_v34, 0.0  ;;  %vm750_vm15 = vcmp.eq.f32.partialorder %v2089_v45, inf }
 0x193   :  { %v2117_v40 = vmax.f32 %v707_v56, 1e-12  ;;  %v2119_v53 = vmax.f32 %v703_v4, 1e-12  ;;  %1255 = vrsqrt.f32 %v2048_v33  ;;  %vm752_vm7 = vcmp.eq.f32.partialorder %v2089_v45, 0.0 }
 0x194   :  { %v823_v44 = vand.u32 2147483648, %v2063_v34  ;;  %v753_v52 = vand.u32 2147483648, %v2089_v45  ;;  %vm806_vm12 = vcmp.eq.f32.partialorder %v2087_v13, inf  ;;  %vm808_vm14 = vcmp.eq.f32.partialorder %v2087_v13, 0.0 }
 0x195   :  { %1257 = vrsqrt.f32 %v2117_v40  ;;  %vm943_vm13 = vcmp.eq.f32.partialorder %v2017_v47, 0.0 }
 0x196   :  { %1259 = vrsqrt.f32 %v2119_v53  ;;  %v2145_v56 = vpop.xlane.xlu0 %722  ;;  %v713_v4 = vpop.xlane.xlu1 %712 }
 0x197   :  { %v1248_v58 = vpop.eup %1247  ;;  %v2157_v39 = vmax.f32 %v713_v4, 1e-12 }
 0x198   :  { %v1250_v31 = vpop.eup %1249  ;;  %v819_v48 = vmul.f32 %v1248_v58, %v2063_v34 }
 0x199   :  { %v763_v25 = vmul.f32 %v1250_v31, %v2065_v61  ;;  %1261 = vrsqrt.f32 %v2157_v39 }
 0x19a   :  { %v719_v35 = vpop.xlane.xlu0 %718  ;;  %v2179_v49 = vpop.xlane.xlu1 %728  ;;  %v821_v36 = vsel %vm820_vm10, %v2063_v34, %v819_v48  ;;  %v809_v48 = vand.u32 2147483648, %v2087_v13  ;;  %vm759_vm10 = vcmp.eq.f32.partialorder %v2119_v53, 0.0 }
 0x19b   :  { %v1252_v46 = vpop.eup %1251  ;;  %v2184_v17 = vmax.f32 %v719_v35, 1e-12  ;;  %v765_v42 = vsel %vm764_vm3, %v2065_v61, %v763_v25  ;;  %v824_v32 = vsel %vm822_vm0, %v823_v44, %v821_v36  ;;  %vm757_vm3 = vcmp.eq.f32.partialorder %v2119_v53, inf  ;;  %vm2221_vm0 = vmor %vm582_vm6, %vm598_vm4 }
 0x19c   :  { %v1254_v4 = vpop.eup %1253  ;;  %v768_v58 = vsel %vm766_vm9, %v767_v12, %v765_v42  ;;  %v805_v31 = vmul.f32 %v1252_v46, %v2087_v13  ;;  %v998_v25 = vsub.f32 %v952_v41, %v824_v32  ;;  %v760_v41 = vand.u32 2147483648, %v2119_v53  ;;  %vm2241_vm6 = vmor %vm580_vm5, %vm596_vm2 }
 0x19d   :  { %v749_v35 = vmul.f32 %v1254_v4, %v2089_v45  ;;  %v990_v34 = vsub.f32 %v2059_v22, %v768_v58  ;;  %v2203_v44 = vpop.eup %1255  ;;  %1263 = vrsqrt.f32 %v2184_v17  ;;  %vm771_vm9 = vcmp.eq.f32.partialorder %v2117_v40, inf }
 0x19e   :  { %v709_v61 = vpop.xlane.xlu1 %708  ;;  %v715_v12 = vpop.xlane.xlu0 %714  ;;  %v1014_v36 = vadd.f32 0.3, %v998_v25  ;;  %v2228_v25 = vmax.f32 %v2145_v56, 1e-12  ;;  %v807_v43 = vsel %vm806_vm12, %v2087_v13, %v805_v31  ;;  %vm773_vm4 = vcmp.eq.f32.partialorder %v2117_v40, 0.0 }
 0x19f   :  { %v1258_v46 = vpop.eup %1257  ;;  %v2210_v42 = vmax.f32 %v709_v61, 1e-12  ;;  %v2212_v32 = vmax.f32 %v715_v12, 1e-12  ;;  %v751_v22 = vsel %vm750_vm15, %v2089_v45, %v749_v35  ;;  %v1006_v58 = vadd.f32 0.3, %v990_v34 }
 0x1a0   :  { %v1260_v38 = vpop.eup %1259  ;;  %v754_v35 = vsel %vm752_vm7, %v753_v52, %v751_v22  ;;  %v770_v61 = vmul.f32 %v1258_v46, %v2117_v40  ;;  %vm2653_vm7 = vcmp.eq.s32.totalorder %v1549_v0, %v1592_v27  ;;  %v810_v46 = vsel %vm808_vm14, %v809_v48, %v807_v43 }
 0x1a1   :  { %1265 = vrsqrt.f32 %v2210_v42  ;;  %v988_v56 = vsub.f32 %v2053_v26, %v754_v35  ;;  %v756_v45 = vmul.f32 %v1260_v38, %v2119_v53  ;;  %v1022_v52 = vmax.f32 %v1006_v58, 0.0  ;;  %vm630_vm12 = vmand %vm2653_vm7, %vm2221_vm0 }
 0x1a2   :  { %1267 = vrsqrt.f32 %v2212_v32  ;;  %v2248_v12 = vpop.xlane.xlu0 %730  ;;  %v772_v10 = vsel %vm771_vm9, %v2117_v40, %v770_v61  ;;  %v774_v26 = vand.u32 2147483648, %v2117_v40  ;;  %vm2654_vm5 = vcmp.eq.s32.totalorder %v2038_v24, 3 }
 0x1a3   :  { %v1004_v38 = vadd.f32 0.3, %v988_v56  ;;  %v758_v31 = vsel %vm757_vm3, %v2119_v53, %v756_v45  ;;  %vm2269_vm2 = vmor %vm2654_vm5, %vm606_vm8  ;;  %v1030_v22 = vmax.f32 %v1014_v36, 0.0  ;;  %v1262_v4 = vpop.eup %1261  ;;  %vm2657_vm15 = vcmp.eq.s32.totalorder %v1545_v60, %v1592_v27 }
 0x1a4   :  { %vm2278_vm0 = vmand %vm2657_vm15, %vm2241_vm6  ;;  %v761_v13 = vsel %vm759_vm10, %v760_v41, %v758_v31  ;;  %v1038_v48 = vsel %vm630_vm12, %v1022_v52, 0.0  ;;  %v775_v24 = vsel %vm773_vm4, %v774_v26, %v772_v10  ;;  %v2660_v58 = vand.u32 2147483648, %v2017_v47 }
 0x1a5   :  { %1269 = vrsqrt.f32 %v2228_v25  ;;  %v1020_v35 = vmax.f32 %v1004_v38, 0.0  ;;  %vm2661_vm14 = vcmp.eq.s32.totalorder %v2007_v16, 6  ;;  %vm2662_vm8 = vcmp.eq.s32.totalorder %v2007_v16, 3 }
 0x1a6   :  { %v2289_v36 = vsel %vm943_vm13, %v2660_v58, %v2164_v19  ;;  %vm2296_vm3 = vmor %vm2662_vm8, %vm2661_vm14  ;;  %vm792_vm10 = vcmp.eq.f32.partialorder %v2157_v39, inf  ;;  %vm794_vm9 = vcmp.eq.f32.partialorder %v2157_v39, 0.0  ;;  %vm584_vm6 = vcmp.eq.s32.totalorder %v2024_v50, 3  ;;  %v711_v47 = vpop.xlane.xlu0 %710 }
 0x1a7   :  { %vm600_vm13 = vcmp.eq.s32.totalorder %v2024_v50, 6  ;;  %v989_v53 = vsub.f32 %v2078_v20, %v761_v13  ;;  %v991_v19 = vsub.f32 %v2132_v29, %v775_v24  ;;  %v791_v41 = vmul.f32 %v1262_v4, %v2157_v39  ;;  %v1264_v43 = vpop.eup %1263 }
 0x1a8   :  { %v996_v16 = vsub.f32 %v2149_v51, %v810_v46  ;;  %vm2665_vm7 = vcmp.eq.s32.totalorder %v1580_v21, %v1592_v27  ;;  %vm605_vm5 = vcmp.eq.s32.totalorder %v2044_v1, 6  ;;  %v2315_v61 = vmax.f32 %v711_v47, 1e-12 }
 0x1a9   :  { %vm638_vm12 = vmand %vm2665_vm7, %vm2269_vm2  ;;  %v1036_v20 = vsel %vm2278_vm0, %v1020_v35, 0.0  ;;  %vm2666_vm15 = vcmp.eq.s32.totalorder %v2010_v57, 6  ;;  %vm2667_vm14 = vcmp.eq.s32.totalorder %v2010_v57, 3  ;;  %v795_v21 = vand.u32 2147483648, %v2157_v39 }
 0x1aa   :  { %vm2323_vm8 = vmor %vm2667_vm14, %vm2666_vm15  ;;  %v2328_v51 = vsel %vm638_vm12, %v1030_v22, 0.0  ;;  %vm603_vm7 = vcmp.eq.s32.totalorder %v2035_v6, 6  ;;  %1052 = vadd.xlane.f32.xlu0 %v1036_v20  ;;  %vm2670_vm0 = vcmp.eq.s32.totalorder %v1547_v62, %v1592_v27  ;;  %v1005_v34 = vadd.f32 0.3, %v989_v53 }
 0x1ab   :  { %vm2337_vm4 = vmand %vm2670_vm0, %vm2296_vm3  ;;  %v1007_v56 = vadd.f32 0.3, %v991_v19  ;;  %v793_v45 = vsel %vm792_vm10, %v2157_v39, %v791_v41  ;;  %v1012_v52 = vadd.f32 0.3, %v996_v16  ;;  %1271 = vrsqrt.f32 %v2315_v61 }
 0x1ac   :  { %v796_v10 = vsel %vm794_vm9, %v795_v21, %v793_v45  ;;  %vm2673_vm12 = vcmp.eq.s32.totalorder %v2032_v63, 6  ;;  %vm2674_vm15 = vcmp.eq.s32.totalorder %v2032_v63, 3  ;;  %vm813_vm14 = vcmp.eq.f32.partialorder %v2184_v17, inf  ;;  %v1266_v63 = vpop.eup %1265 }
 0x1ad   :  { %vm2351_vm3 = vmor %vm2674_vm15, %vm2673_vm12  ;;  %vm815_vm0 = vcmp.eq.f32.partialorder %v2184_v17, 0.0  ;;  %v1021_v26 = vmax.f32 %v1005_v34, 0.0  ;;  %vm2677_vm10 = vcmp.eq.s32.totalorder %v1551_v3, %v1592_v27  ;;  %v1023_v39 = vmax.f32 %v1007_v56, 0.0  ;;  %v1268_v22 = vpop.eup %1267 }
 0x1ae   :  { %vm631_vm2 = vmand %vm2677_vm10, %vm2323_vm8  ;;  %v994_v38 = vsub.f32 %v2140_v2, %v796_v10  ;;  %v1028_v31 = vmax.f32 %v1012_v52, 0.0  ;;  %vm778_vm9 = vcmp.eq.f32.partialorder %v2210_v42, inf  ;;  %vm780_vm12 = vcmp.eq.f32.partialorder %v2210_v42, 0.0  ;;  %1056 = vadd.xlane.f32.xlu0 %v1038_v48 }
 0x1af   :  { %v781_v46 = vand.u32 2147483648, %v2210_v42  ;;  %vm2370_vm15 = vmor %vm586_vm11, %vm602_vm1  ;;  %v812_v3 = vmul.f32 %v1264_v43, %v2184_v17  ;;  %v1037_v2 = vsel %vm2337_vm4, %v1021_v26, 0.0  ;;  %v1039_v4 = vsel %vm631_vm2, %v1023_v39, 0.0  ;;  %v1270_v47 = vpop.eup %1269 }
 0x1b0   :  { %v777_v40 = vmul.f32 %v1266_v63, %v2210_v42  ;;  %v1010_v13 = vadd.f32 0.3, %v994_v38  ;;  %vm2680_vm8 = vcmp.eq.s32.totalorder %v1571_v14, %v1592_v27  ;;  %1054 = vadd.xlane.f32.xlu1 %v1037_v2  ;;  %v798_v24 = vmul.f32 %v1268_v22, %v2212_v32  ;;  %vm616_vm10 = vmor %vm584_vm6, %vm600_vm13  ;;  %v547_v63 = vpop.permute.xlu1 %546 }
 0x1b1   :  { %vm636_vm11 = vmand %vm2680_vm8, %vm2351_vm3  ;;  %v814_v58 = vsel %vm813_vm14, %v2184_v17, %v812_v3  ;;  %v816_v48 = vand.u32 2147483648, %v2184_v17  ;;  %vm799_vm1 = vcmp.eq.f32.partialorder %v2212_v32, inf  ;;  %v802_v14 = vand.u32 2147483648, %v2212_v32 }
 0x1b2   :  { %v2383_v30 = vsel %vm636_vm11, %v1028_v31, 0.0  ;;  %v779_v35 = vsel %vm778_vm9, %v2210_v42, %v777_v40  ;;  %v1026_v60 = vmax.f32 %v1010_v13, 0.0  ;;  %vm2681_vm4 = vcmp.eq.s32.totalorder %v1563_v9, %v1592_v27  ;;  %1058 = vadd.xlane.f32.xlu0 %v1039_v4  ;;  %v2692_v4 = vld [vmem:[#allocation5_spill] sm:$0xff] }
 0x1b3   :  { %v782_v53 = vsel %vm780_vm12, %v781_v46, %v779_v35  ;;  %vm634_vm2 = vmand %vm2681_vm4, %vm2370_vm15  ;;  %v800_v19 = vsel %vm799_vm1, %v2212_v32, %v798_v24  ;;  %vm801_vm3 = vcmp.eq.f32.partialorder %v2212_v32, 0.0  ;;  %v817_v41 = vsel %vm815_vm0, %v816_v48, %v814_v58 }
 0x1b4   :  { %v992_v16 = vsub.f32 %v2136_v8, %v782_v53  ;;  %v1042_v20 = vsel %vm634_vm2, %v1026_v60, 0.0  ;;  %v803_v29 = vsel %vm801_vm3, %v802_v14, %v800_v19  ;;  %v997_v42 = vsub.f32 %v2289_v36, %v817_v41  ;;  %v550_v60 = vpop.permute.xlu0 %549 }
 0x1b5   :  { %vm585_vm14 = vcmp.eq.s32.totalorder %v2021_v59, 3  ;;  %v995_v9 = vsub.f32 %v2155_v23, %v803_v29  ;;  %vm601_vm9 = vcmp.eq.s32.totalorder %v2021_v59, 6  ;;  %vm913_vm0 = vcmp.eq.f32.partialorder %v1999_v55, inf  ;;  %v1272_v36 = vpop.eup %1271 }
 0x1b6   :  { %v1008_v17 = vadd.f32 0.3, %v992_v16  ;;  %vm2682_vm12 = vcmp.eq.s32.totalorder %v2044_v1, 3  ;;  %v1013_v32 = vadd.f32 0.3, %v997_v42  ;;  %v914_v50 = vsel %vm913_vm0, %v1999_v55, %v2094_v15 }
 0x1b7   :  { %vm2420_vm15 = vmor %vm2682_vm12, %vm605_vm5  ;;  %vm915_vm6 = vcmp.eq.f32.partialorder %v1999_v55, 0.0  ;;  %v916_v23 = vand.u32 2147483648, %v1999_v55  ;;  %vm2685_vm13 = vcmp.eq.s32.totalorder %v2035_v6, 3  ;;  %v1011_v1 = vadd.f32 0.3, %v995_v9 }
 0x1b8   :  { %vm2432_vm8 = vmor %vm2685_vm13, %vm603_vm7  ;;  %vm2688_vm5 = vcmp.eq.s32.totalorder %v1555_v5, %v1592_v27  ;;  %v1024_v43 = vmax.f32 %v1008_v17, 0.0  ;;  %v784_v15 = vmul.f32 %v1272_v36, %v2315_v61  ;;  %v1029_v57 = vmax.f32 %v1013_v32, 0.0 }
 0x1b9   :  { %vm632_vm11 = vmand %vm2688_vm5, %vm616_vm10  ;;  %v826_v34 = vmul.f32 %v1270_v47, %v2228_v25  ;;  %vm785_vm1 = vcmp.eq.f32.partialorder %v2315_v61, inf  ;;  %v788_v56 = vand.u32 2147483648, %v2315_v61  ;;  %v1027_v6 = vmax.f32 %v1011_v1, 0.0 }
 0x1ba   :  { %vm2689_vm7 = vcmp.eq.s32.totalorder %v1576_v18, %v1592_v27  ;;  %v954_v5 = vmul.f32 %v2203_v44, %v2048_v33  ;;  %v1040_v45 = vsel %vm632_vm11, %v1024_v43, 0.0  ;;  %v786_v52 = vsel %vm785_vm1, %v2315_v61, %v784_v15 }
 0x1bb   :  { %vm637_vm4 = vmand %vm2689_vm7, %vm2420_vm15  ;;  %vm787_vm2 = vcmp.eq.f32.partialorder %v2315_v61, 0.0  ;;  %vm2690_vm3 = vcmp.eq.s32.totalorder %v1567_v11, %v1592_v27  ;;  %1060 = vadd.xlane.f32.xlu1 %v1040_v45  ;;  %v917_v18 = vsel %vm915_vm6, %v916_v23, %v914_v50  ;;  %vm827_vm0 = vcmp.eq.f32.partialorder %v2228_v25, inf }
 0x1bc   :  { %vm635_vm10 = vmand %vm2690_vm3, %vm2432_vm8  ;;  %v1045_v10 = vsel %vm637_vm4, %v1029_v57, 0.0  ;;  %v789_v62 = vsel %vm787_vm2, %v788_v56, %v786_v52  ;;  %v828_v39 = vsel %vm827_vm0, %v2228_v25, %v826_v34  ;;  %v830_v61 = vand.u32 2147483648, %v2228_v25 }
 0x1bd   :  { %v1043_v26 = vsel %vm635_vm10, %v1027_v6, 0.0  ;;  %v993_v44 = vsub.f32 %v917_v18, %v789_v62  ;;  %vm955_vm12 = vcmp.eq.f32.partialorder %v2048_v33, inf  ;;  %vm617_vm15 = vmor %vm585_vm14, %vm601_vm9  ;;  %vm829_vm13 = vcmp.eq.f32.partialorder %v2228_v25, 0.0 }
 0x1be   :  { %v956_v55 = vsel %vm955_vm12, %v2048_v33, %v954_v5  ;;  %v831_v38 = vsel %vm829_vm13, %v830_v61, %v828_v39  ;;  %v958_v31 = vand.u32 2147483648, %v2048_v33  ;;  %vm957_vm6 = vcmp.eq.f32.partialorder %v2048_v33, 0.0 }
 0x1bf   :  { %v1009_v11 = vadd.f32 0.3, %v993_v44  ;;  %1064 = vadd.xlane.f32.xlu1 %v1042_v20  ;;  %vm2691_vm8 = vcmp.eq.s32.totalorder %v1559_v7, %v1592_v27  ;;  %v575_v22 = vmul.u32 %v1989_v37, %v547_v63  ;;  %v872_v7 = vmax.f32 %v1926_v54, 1e-12 }
 0x1c0   :  { %vm633_vm5 = vmand %vm2691_vm8, %vm617_vm15  ;;  %v959_v0 = vsel %vm957_vm6, %v958_v31, %v956_v55  ;;  %v874_v2 = vmax.f32 %v1913_v28, 1e-12  ;;  %vm2693_vm1 = vcmp.eq.s32.totalorder %v2692_v4, %v1592_v27  ;;  %v746_v40 = vmax.f32 %v2179_v49, 1e-12  ;;  %v2700_v4 = vld [vmem:[#allocation6_spill] sm:$0xff] }
 0x1c1   :  { %v1025_v46 = vmax.f32 %v1009_v11, 0.0  ;;  %v999_v3 = vsub.f32 %v959_v0, %v831_v38  ;;  %vm591_vm14 = vcmp.eq.s32.totalorder %v575_v22, 3  ;;  %vm607_vm9 = vcmp.eq.s32.totalorder %v575_v22, 6 }
 0x1c2   :  { %vm623_vm11 = vmor %vm591_vm14, %vm607_vm9  ;;  %1273 = vrsqrt.f32 %v872_v7  ;;  %v2491_v28 = vmax.f32 %v2248_v12, 1e-12  ;;  %vm962_vm4 = vcmp.eq.f32.partialorder %v872_v7, inf  ;;  %vm964_vm2 = vcmp.eq.f32.partialorder %v872_v7, 0.0 }
 0x1c3   :  { %v1041_v59 = vsel %vm633_vm5, %v1025_v46, 0.0  ;;  %1068 = vadd.xlane.f32.xlu1 %v2383_v30  ;;  %v1015_v25 = vadd.f32 0.3, %v999_v3  ;;  %vm639_vm7 = vmand %vm2693_vm1, %vm623_vm11  ;;  %v2694_v30 = vld [vmem:[#allocation10_spill] sm:$0xff]  ;;  %1275 = vrsqrt.f32 %v874_v2  ;;  %vm848_vm3 = vcmp.eq.f32.partialorder %v746_v40, inf }
 0x1c4   :  { %1062 = vadd.xlane.f32.xlu0 %v1041_v59  ;;  %v2484_v24 = vmax.f32 %v2694_v30, 1e-12  ;;  %1277 = vrsqrt.f32 %v746_v40  ;;  %vm976_vm10 = vcmp.eq.f32.partialorder %v874_v2, inf  ;;  %v965_v17 = vand.u32 2147483648, %v872_v7 }
 0x1c5   :  { %v1031_v33 = vmax.f32 %v1015_v25, 0.0  ;;  %vm978_vm0 = vcmp.eq.f32.partialorder %v874_v2, 0.0  ;;  %v576_v50 = vmul.u32 %v1989_v37, %v550_v60  ;;  %v851_v23 = vand.u32 2147483648, %v746_v40 }
 0x1c6   :  { %1279 = vrsqrt.f32 %v2484_v24  ;;  %v979_v21 = vand.u32 2147483648, %v874_v2  ;;  %vm969_vm12 = vcmp.eq.f32.partialorder %v2484_v24, inf  ;;  %vm850_vm15 = vcmp.eq.f32.partialorder %v746_v40, 0.0 }
 0x1c7   :  { %1072 = vadd.xlane.f32.xlu1 %v2328_v51  ;;  %v1047_v13 = vsel %vm639_vm7, %v1031_v33, 0.0  ;;  %v2695_v51 = vld [vmem:[#allocation11_spill] sm:$0xff]  ;;  %vm592_vm8 = vcmp.eq.s32.totalorder %v576_v50, 3  ;;  %vm608_vm5 = vcmp.eq.s32.totalorder %v576_v50, 6  ;;  %v972_v39 = vand.u32 2147483648, %v2484_v24 }
 0x1c8   :  { %1066 = vadd.xlane.f32.xlu0 %v1043_v26  ;;  %v2488_v54 = vmax.f32 %v2695_v51, 1e-12  ;;  %vm971_vm11 = vcmp.eq.f32.partialorder %v2484_v24, 0.0  ;;  %vm855_vm1 = vcmp.eq.f32.partialorder %v2491_v28, inf  ;;  %vm2509_vm7 = vmor %vm592_vm8, %vm608_vm5  ;;  %v858_v0 = vand.u32 2147483648, %v2491_v28 }
 0x1ca   :  { %1281 = vrsqrt.f32 %v2488_v54  ;;  %v986_v3 = vand.u32 2147483648, %v2488_v54 }
 0x1cb   :  { %1283 = vrsqrt.f32 %v2491_v28 }
 0x1cc   :  { %1070 = vadd.xlane.f32.xlu0 %v1045_v10  ;;  %v1274_v49 = vpop.eup %1273 }
 0x1cd   :  { %v1276_v35 = vpop.eup %1275  ;;  %v961_v53 = vmul.f32 %v1274_v49, %v872_v7 }
 0x1ce   :  { %v1278_v14 = vpop.eup %1277  ;;  %v975_v16 = vmul.f32 %v1276_v35, %v874_v2 }
 0x1cf   :  { %v847_v41 = vmul.f32 %v1278_v14, %v746_v40  ;;  %v963_v42 = vsel %vm962_vm4, %v872_v7, %v961_v53  ;;  %vm983_vm4 = vcmp.eq.f32.partialorder %v2488_v54, inf }
 0x1d0   :  { %1074 = vadd.xlane.f32.xlu0 %v1047_v13  ;;  %v1280_v47 = vpop.eup %1279  ;;  %v977_v32 = vsel %vm976_vm10, %v874_v2, %v975_v16  ;;  %v966_v15 = vsel %vm964_vm2, %v965_v17, %v963_v42  ;;  %vm2701_vm10 = vcmp.eq.s32.totalorder %v2700_v4, %v1592_v27 }
 0x1d1   :  { %v968_v12 = vmul.f32 %v1280_v47, %v2484_v24  ;;  %v849_v8 = vsel %vm848_vm3, %v746_v40, %v847_v41  ;;  %v980_v6 = vsel %vm978_vm0, %v979_v21, %v977_v32  ;;  %vm857_vm3 = vcmp.eq.f32.partialorder %v2491_v28, 0.0  ;;  %vm640_vm0 = vmand %vm2701_vm10, %vm2509_vm7  ;;  %v2704_v47 = vld [vmem:[#allocation7_spill] sm:$0xff] }
 0x1d2   :  { %v852_v56 = vsel %vm850_vm15, %v851_v23, %v849_v8 }
 0x1d3   :  { %v725_v58 = vpop.xlane.xlu1 %724  ;;  %v970_v57 = vsel %vm969_vm12, %v2484_v24, %v968_v12  ;;  %v1002_v44 = vsub.f32 %v980_v6, %v852_v56 }
 0x1d4   :  { %v744_v48 = vmax.f32 %v725_v58, 1e-12  ;;  %v1282_v29 = vpop.eup %1281  ;;  %v973_v38 = vsel %vm971_vm11, %v972_v39, %v970_v57 }
 0x1d5   :  { %v1284_v9 = vpop.eup %1283  ;;  %v982_v10 = vmul.f32 %v1282_v29, %v2488_v54  ;;  %v1018_v33 = vadd.f32 0.3, %v1002_v44 }
 0x1d6   :  { %1285 = vrsqrt.f32 %v744_v48  ;;  %vm834_vm13 = vcmp.eq.f32.partialorder %v744_v48, inf  ;;  %v837_v34 = vand.u32 2147483648, %v744_v48  ;;  %vm836_vm6 = vcmp.eq.f32.partialorder %v744_v48, 0.0 }
 0x1d7   :  { %v553_v1 = vpop.permute.xlu1 %552  ;;  %v854_v52 = vmul.f32 %v1284_v9, %v2491_v28  ;;  %v984_v59 = vsel %vm983_vm4, %v2488_v54, %v982_v10  ;;  %v1034_v58 = vmax.f32 %v1018_v33, 0.0  ;;  %vm2705_vm4 = vcmp.eq.s32.totalorder %v2704_v47, %v1592_v27 }
 0x1d8   :  { %v577_v46 = vmul.u32 %v1989_v37, %v553_v1 }
 0x1d9   :  { %v856_v31 = vsel %vm855_vm1, %v2491_v28, %v854_v52 }
 0x1da   :  { %v859_v13 = vsel %vm857_vm3, %v858_v0, %v856_v31  ;;  %vm609_vm8 = vcmp.eq.s32.totalorder %v577_v46, 6 }
 0x1db   :  { %v727_v19 = vpop.xlane.xlu0 %726  ;;  %v559_v61 = vpop.permute.xlu1 %558 }
 0x1dc   :  { %v2495_v20 = vmax.f32 %v727_v19, 1e-12  ;;  %v579_v2 = vmul.u32 %v1989_v37, %v559_v61  ;;  %v2706_v19 = vld [vmem:[#allocation9_spill] sm:$0xff] }
 0x1de   :  { %1287 = vrsqrt.f32 %v2495_v20  ;;  %vm841_vm12 = vcmp.eq.f32.partialorder %v2495_v20, inf  ;;  %v844_v40 = vand.u32 2147483648, %v2495_v20  ;;  %vm843_vm15 = vcmp.eq.f32.partialorder %v2495_v20, 0.0 }
 0x1df   :  { %vm611_vm11 = vcmp.eq.s32.totalorder %v579_v2, 6 }
 0x1e0   :  { %v1286_v36 = vpop.eup %1285 }
 0x1e1   :  { %v833_v43 = vmul.f32 %v1286_v36, %v744_v48 }
 0x1e3   :  { %v556_v5 = vpop.permute.xlu0 %555  ;;  %v835_v45 = vsel %vm834_vm13, %v744_v48, %v833_v43  ;;  %vm985_vm13 = vcmp.eq.f32.partialorder %v2488_v54, 0.0 }
 0x1e4   :  { %v578_v62 = vmul.u32 %v1989_v37, %v556_v5  ;;  %v838_v18 = vsel %vm836_vm6, %v837_v34, %v835_v45  ;;  %vm593_vm6 = vcmp.eq.s32.totalorder %v577_v46, 3  ;;  %v2702_v37 = vld [vmem:[#allocation8_spill] sm:$0xff]  ;;  %v987_v28 = vsel %vm985_vm13, %v986_v3, %v984_v59 }
 0x1e5   :  { %v1000_v26 = vsub.f32 %v966_v15, %v838_v18  ;;  %vm2703_vm5 = vcmp.eq.s32.totalorder %v2702_v37, %v1592_v27  ;;  %v1003_v49 = vsub.f32 %v987_v28, %v859_v13  ;;  %vm625_vm1 = vmor %vm593_vm6, %vm609_vm8 }
 0x1e6   :  { %vm594_vm14 = vcmp.eq.s32.totalorder %v578_v62, 3  ;;  %vm610_vm9 = vcmp.eq.s32.totalorder %v578_v62, 6  ;;  %vm641_vm3 = vmand %vm2705_vm4, %vm625_vm1 }
 0x1e7   :  { %v1016_v55 = vadd.f32 0.3, %v1000_v26  ;;  %vm2521_vm2 = vmor %vm594_vm14, %vm610_vm9  ;;  %vm595_vm9 = vcmp.eq.s32.totalorder %v579_v2, 3  ;;  %v1019_v14 = vadd.f32 0.3, %v1003_v49 }
 0x1e8   :  { %v1288_v63 = vpop.eup %1287  ;;  %vm642_vm14 = vmand %vm2703_vm5, %vm2521_vm2  ;;  %vm2707_vm2 = vcmp.eq.s32.totalorder %v2706_v19, %v1592_v27 }
 0x1e9   :  { %v1032_v22 = vmax.f32 %v1016_v55, 0.0  ;;  %v840_v7 = vmul.f32 %v1288_v63, %v2495_v20  ;;  %v1050_v35 = vsel %vm642_vm14, %v1034_v58, 0.0  ;;  %vm627_vm7 = vmor %vm595_vm9, %vm611_vm11  ;;  %v1035_v41 = vmax.f32 %v1019_v14, 0.0 }
 0x1ea   :  { %vm643_vm10 = vmand %vm2707_vm2, %vm627_vm7 }
 0x1eb   :  { %v1048_v30 = vsel %vm640_vm0, %v1032_v22, 0.0  ;;  %v842_v24 = vsel %vm841_vm12, %v2495_v20, %v840_v7  ;;  %v1051_v16 = vsel %vm643_vm10, %v1035_v41, 0.0  ;;  %vm1105_vm0 = vcmask 0  }
 0x1ec   :  { %1076 = vadd.xlane.f32.xlu1 %v1048_v30  ;;  %v845_v51 = vsel %vm843_vm15, %v844_v40, %v842_v24 }
 0x1ed   :  { %v1001_v48 = vsub.f32 %v973_v38, %v845_v51 }
 0x1ef   :  { %v1017_v60 = vadd.f32 0.3, %v1001_v48 }
 0x1f0   :  { %1080 = vadd.xlane.f32.xlu1 %v1050_v35 }
 0x1f1   :  { %v1033_v54 = vmax.f32 %v1017_v60, 0.0 }
 0x1f3   :  { %v1049_v53 = vsel %vm641_vm3, %v1033_v54, 0.0 }
 0x1f4   :  { %1078 = vadd.xlane.f32.xlu0 %v1049_v53 }
 0x1f8   :  { %1082 = vadd.xlane.f32.xlu0 %v1051_v16 }
 0x237   :  { %v1053_v20 = vpop.xlane.xlu0 %1052 }
 0x23b   :  { %v1057_v29 = vpop.xlane.xlu0 %1056 }
 0x23d   :  { %v1055_v12 = vpop.xlane.xlu1 %1054 }
 0x23e   :  { %v1084_v42 = vadd.f32 %v1055_v12, %v1053_v20 }
 0x23f   :  { %v1059_v17 = vpop.xlane.xlu0 %1058 }
 0x240   :  { %v1085_v9 = vadd.f32 %v1084_v42, %v1057_v29 }
 0x242   :  { %v1086_v32 = vadd.f32 %v1085_v9, %v1059_v17 }
 0x248   :  { %v1061_v8 = vpop.xlane.xlu1 %1060 }
 0x249   :  { %v1087_v50 = vadd.f32 %v1086_v32, %v1061_v8 }
 0x24c   :  { %v1065_v21 = vpop.xlane.xlu1 %1064 }
 0x250   :  { %v1069_v27 = vpop.xlane.xlu1 %1068 }
 0x251   :  { %v1063_v36 = vpop.xlane.xlu0 %1062 }
 0x252   :  { %v1088_v23 = vadd.f32 %v1087_v50, %v1063_v36 }
 0x254   :  { %v1089_v1 = vadd.f32 %v1088_v23, %v1065_v21  ;;  %v1073_v6 = vpop.xlane.xlu1 %1072 }
 0x255   :  { %v1067_v43 = vpop.xlane.xlu0 %1066 }
 0x256   :  { %v1090_v15 = vadd.f32 %v1089_v1, %v1067_v43 }
 0x258   :  { %v1091_v57 = vadd.f32 %v1090_v15, %v1069_v27 }
 0x259   :  { %v1071_v34 = vpop.xlane.xlu0 %1070 }
 0x25a   :  { %v1092_v56 = vadd.f32 %v1091_v57, %v1071_v34 }
 0x25c   :  { %v1093_v5 = vadd.f32 %v1092_v56, %v1073_v6 }
 0x25d   :  { %v1075_v45 = vpop.xlane.xlu0 %1074 }
 0x25e   :  { %v1094_v10 = vadd.f32 %v1093_v5, %v1075_v45 }
 0x279   :  { %v1077_v52 = vpop.xlane.xlu1 %1076 }
 0x27a   :  { %v1095_v62 = vadd.f32 %v1094_v10, %v1077_v52 }
 0x27d   :  { %v1081_v44 = vpop.xlane.xlu1 %1080 }
 0x281   :  { %v1079_v18 = vpop.xlane.xlu0 %1078 }
 0x282   :  { %v1096_v26 = vadd.f32 %v1095_v62, %v1079_v18 }
 0x284   :  { %v1097_v39 = vadd.f32 %v1096_v26, %v1081_v44 }
 0x285   :  { %v1083_v61 = vpop.xlane.xlu0 %1082 }
 0x286   :  { %v1098_v11 = vadd.f32 %v1097_v39, %v1083_v61 }
 0x288   :  { %v1099_v55 = vrot.slane %v1098_v11, 4 }
 0x28a   :  { %v1100_v38 = vadd.f32 %v1099_v55, %v1098_v11 }
 0x28c   :  { %v1101_v31 = vrot.slane %v1100_v38, 2 }
 0x28e   :  { %v1102_v63 = vadd.f32 %v1101_v31, %v1100_v38 }
 0x290   :  { %v1103_v46 = vrot.slane %v1102_v63, 1 }
 0x292   :  { %v1104_v0 = vadd.f32 %v1103_v46, %v1102_v63 }
 0x294   :  { %1106 = vst.msk [vmem:[#allocation2] sm:$0x1] %vm1105_vm0, %v1104_v0 }
 0x295   :  { %1300 = shalt.err (!%p1297_p4)
}
 0x296   :  { %s1301_s30 = scalar_lea.hbm %s2570_s9, 16 }
 0x297   :  { %p1302_p5 = scmp.ne.s32.totalorder %s2570_s9, %s1301_s30  ;;  %p1305_p6 = scmp.lt.u32.totalorder %s1301_s30, %s2570_s9 }
 0x299   :  { %p1307_p7 = pnand %p1305_p6, %p1302_p5 }
 0x29b   :  { %1310 = shalt.err (!%p1307_p7)
}
 0x29c   :  { %1116 = dma.vmem_to_hbm [thread:$0]  %s1114_s26, 16, %s2570_s9, [#allocation3]  }
 0x29d   :  { %1311 = dma.done.wait [#allocation3], 16  }
 0x29e   :  { %1312 = vsyncadd [#allocation3], 4294967280 }
 0x29f   :  { %1120 = vsyncpa [#allocation3], 1 }

// kernel: tpu_custom_call.1
= control target key start
LH: loop header
LB: loop body
LE: loop exit
PB: predicated region body
PF: predicated region fallthrough
CT: control target
= control target key end

     0   :  { %v1313_v2 = vmov 0   ;;  %s2561_s0 = inlined_call_operand.vmem [shape: bf16[128,128], index: 0, kind: input, shape index: {}]   ;;  %s2562_s1 = inlined_call_operand.vmem [shape: bf16[128,128], index: 1, kind: input, shape index: {}]   ;;  %s2563_s2 = inlined_call_operand.vmem [shape: f32[128,1], index: 2, kind: input, shape index: {}]   ;;  %s2564_s3 = inlined_call_operand.vmem [shape: f32[1,128], index: 3, kind: input, shape index: {}]   ;;  %s2565_s4 = inlined_call_operand.vmem [shape: s32[128,1], index: 4, kind: input, shape index: {}]   ;;  %s2566_s5 = inlined_call_operand.vmem [shape: s32[1,128], index: 5, kind: input, shape index: {}]   ;;  %s2567_s6 = inlined_call_operand.vmem [shape: s32[128,1], index: 6, kind: input, shape index: {}]   ;;  %s2568_s7 = inlined_call_operand.vmem [shape: s32[1,128], index: 7, kind: input, shape index: {}]   ;;  %s2569_s8 = inlined_call_operand.vmem [shape: s32[1,128], index: 8, kind: input, shape index: {}]   ;;  %s2570_s9 = inlined_call_operand.hbm [shape: f32[1,1,1], index: 9, kind: output, shape index: {}]  }
   0x1   :  { %v410_v0 = vld [vmem:[%s2565_s4] sm:$0xff]  ;;  %1208 = vset.pattern.permute.xlu1 %v1313_v2  ;;  %1207 = vset.pattern.permute.xlu0 %v1313_v2  ;;  %v411_v4 = vld [vmem:[%s2565_s4 + $0x8] sm:$0xff]  ;;  %v1211_v7 = vld [vmem:[%s2562_s1 + $0x10] sm:$0xff]  }
   0x2   :  { %v259_v1 = vld [vmem:[%s2563_s2] sm:$0xff]  ;;  %428 = vperm.xlu1 %1208, %v410_v0   ;;  %v260_v5 = vld [vmem:[%s2563_s2 + $0x8] sm:$0xff]  ;;  %v412_v8 = vld [vmem:[%s2565_s4 + $0x10] sm:$0xff] }
   0x3   :  { %v1209_v3 = vld [vmem:[%s2562_s1] sm:$0xff]   ;;  %278 = vperm.xlu0 %1207, %v259_v1   ;;  %v1210_v6 = vld [vmem:[%s2562_s1 + $0x8] sm:$0xff]   ;;  %v261_v9 = vld [vmem:[%s2563_s2 + $0x10] sm:$0xff] }
   0x4   :  { %1156 = vmatprep.subr.bf16.mxu0 %v1209_v3  ;;  %1188 = vmatprep.subr.bf16.mxu1 %v1209_v3  ;;  %v1212_v10 = vld [vmem:[%s2562_s1 + $0x18] sm:$0xff]   ;;  %v414_v13 = vld [vmem:[%s2565_s4 + $0x20] sm:$0xff]  ;;  %v1214_v18 = vld [vmem:[%s2562_s1 + $0x28] sm:$0xff]  }
   0x5   :  { %1157 = vmatpush3.bf16.msra.mxu0 %v1209_v3  ;;  %1196 = vmatpush3.bf16.msra.mxu1 %v1209_v3  ;;  %v413_v11 = vld [vmem:[%s2565_s4 + $0x18] sm:$0xff]  ;;  %v1213_v14 = vld [vmem:[%s2562_s1 + $0x20] sm:$0xff]   ;;  %v415_v19 = vld [vmem:[%s2565_s4 + $0x28] sm:$0xff] }
   0x6   :  { %1158 = vmatprep.subr.bf16.mxu0 %v1210_v6  ;;  %1189 = vmatprep.subr.bf16.mxu1 %v1210_v6  ;;  %v262_v12 = vld [vmem:[%s2563_s2 + $0x18] sm:$0xff]  ;;  %v263_v15 = vld [vmem:[%s2563_s2 + $0x20] sm:$0xff]  ;;  %v264_v20 = vld [vmem:[%s2563_s2 + $0x28] sm:$0xff] }
   0x7   :  { %431 = vperm.xlu1 %1208, %v411_v4   ;;  %283 = vperm.xlu0 %1207, %v260_v5   ;;  %v1217_v16 = vld [vmem:[%s2561_s0] sm:$0xff]   ;;  %v1215_v21 = vld [vmem:[%s2562_s1 + $0x30] sm:$0xff]   ;;  %v1216_v24 = vld [vmem:[%s2562_s1 + $0x38] sm:$0xff]  }
   0x8   :  { %v1218_v17 = vld [vmem:[%s2561_s0 + $0x20] sm:$0xff]   ;;  %1172 = vmatprep.mubr.bf16.mxu0 %v1217_v16  ;;  %v416_v22 = vld [vmem:[%s2565_s4 + $0x30] sm:$0xff]  ;;  %v417_v25 = vld [vmem:[%s2565_s4 + $0x38] sm:$0xff] }
   0x9   :  { %1159 = vmatpush3.bf16.msra.mxu0 %v1210_v6  ;;  %1197 = vmatpush3.bf16.msra.mxu1 %v1210_v6  ;;  %v265_v23 = vld [vmem:[%s2563_s2 + $0x30] sm:$0xff]  ;;  %v266_v26 = vld [vmem:[%s2563_s2 + $0x38] sm:$0xff]  ;;  %v418_v27 = vld [vmem:[%s2565_s4 + $0x40] sm:$0xff] }
   0xa   :  { %1160 = vmatprep.subr.bf16.mxu0 %v1211_v7  ;;  %1190 = vmatprep.subr.bf16.mxu1 %v1211_v7  ;;  %v267_v28 = vld [vmem:[%s2563_s2 + $0x40] sm:$0xff]  ;;  %v1219_v29 = vld [vmem:[%s2561_s0 + $0x8] sm:$0xff]  }
   0xb   :  { %434 = vperm.xlu1 %1208, %v412_v8   ;;  %288 = vperm.xlu0 %1207, %v261_v9   ;;  %v1220_v30 = vld [vmem:[%s2561_s0 + $0x28] sm:$0xff]  }
   0xc   :  { %1180 = vmatprep.mubr.bf16.mxu1 %v1218_v17 }
   0xd   :  { %1161 = vmatpush3.bf16.msra.mxu0 %v1211_v7  ;;  %1198 = vmatpush3.bf16.msra.mxu1 %v1211_v7 }
   0xe   :  { %1162 = vmatprep.subr.bf16.mxu0 %v1212_v10  ;;  %1191 = vmatprep.subr.bf16.mxu1 %v1212_v10 }
   0xf   :  { %437 = vperm.xlu1 %1208, %v413_v11   ;;  %293 = vperm.xlu0 %1207, %v262_v12  }
  0x11   :  { %1163 = vmatpush3.bf16.msra.mxu0 %v1212_v10  ;;  %1199 = vmatpush3.bf16.msra.mxu1 %v1212_v10 }
  0x12   :  { %1164 = vmatprep.subr.bf16.mxu0 %v1213_v14  ;;  %1192 = vmatprep.subr.bf16.mxu1 %v1213_v14 }
  0x13   :  { %440 = vperm.xlu1 %1208, %v414_v13   ;;  %298 = vperm.xlu0 %1207, %v263_v15  }
  0x15   :  { %1165 = vmatpush3.bf16.msra.mxu0 %v1213_v14  ;;  %1200 = vmatpush3.bf16.msra.mxu1 %v1213_v14 }
  0x16   :  { %1166 = vmatprep.subr.bf16.mxu0 %v1214_v18  ;;  %1193 = vmatprep.subr.bf16.mxu1 %v1214_v18 }
  0x17   :  { %443 = vperm.xlu1 %1208, %v415_v19   ;;  %303 = vperm.xlu0 %1207, %v264_v20  }
  0x19   :  { %1167 = vmatpush3.bf16.msra.mxu0 %v1214_v18  ;;  %1201 = vmatpush3.bf16.msra.mxu1 %v1214_v18 }
  0x1a   :  { %1168 = vmatprep.subr.bf16.mxu0 %v1215_v21  ;;  %1194 = vmatprep.subr.bf16.mxu1 %v1215_v21 }
  0x1b   :  { %446 = vperm.xlu1 %1208, %v416_v22   ;;  %308 = vperm.xlu0 %1207, %v265_v23  }
  0x1d   :  { %1169 = vmatpush3.bf16.msra.mxu0 %v1215_v21  ;;  %1202 = vmatpush3.bf16.msra.mxu1 %v1215_v21 }
  0x1e   :  { %1170 = vmatprep.subr.bf16.mxu0 %v1216_v24  ;;  %1195 = vmatprep.subr.bf16.mxu1 %v1216_v24 }
  0x1f   :  { %449 = vperm.xlu1 %1208, %v417_v25   ;;  %313 = vperm.xlu0 %1207, %v266_v26  }
  0x20   :  { %14 = vsyncpa [#allocation3], 0  ;;  %v1221_v31 = vld [vmem:[%s2561_s0 + $0x10] sm:$0xff]   ;;  %v419_v33 = vld [vmem:[%s2565_s4 + $0x48] sm:$0xff]  ;;  %v663_v13 = vlaneseq  ;;  %vm1314_vm3 = vmmov 1  }
  0x21   :  { %1171 = vmatpush3.bf16.msra.mxu0 %v1216_v24  ;;  %1203 = vmatpush3.bf16.msra.mxu1 %v1216_v24  ;;  %v1222_v32 = vld [vmem:[%s2561_s0 + $0x30] sm:$0xff]   ;;  %v268_v34 = vld [vmem:[%s2563_s2 + $0x48] sm:$0xff]  ;;  %v1223_v37 = vld [vmem:[%s2561_s0 + $0x18] sm:$0xff]  }
  0x22   :  { %v420_v35 = vld [vmem:[%s2565_s4 + $0x50] sm:$0xff]  ;;  %v1224_v38 = vld [vmem:[%s2561_s0 + $0x38] sm:$0xff]   ;;  %v422_v41 = vld [vmem:[%s2565_s4 + $0x60] sm:$0xff]  ;;  %v664_v17 = vshrl.u32 %v663_v13, 7 }
  0x23   :  { %452 = vperm.xlu1 %1208, %v418_v27   ;;  %318 = vperm.xlu0 %1207, %v267_v28   ;;  %v269_v36 = vld [vmem:[%s2563_s2 + $0x50] sm:$0xff]  ;;  %v421_v39 = vld [vmem:[%s2565_s4 + $0x58] sm:$0xff]  ;;  %v271_v42 = vld [vmem:[%s2563_s2 + $0x60] sm:$0xff] }
  0x24   :  { %1173 = vmatmul.mubr.bf16.vlgmr.msra.gmra.mrb[0].mxu0 %v1219_v29  ;;  %1181 = vmatmul.mubr.bf16.vlgmr.msra.gmra.mrb[0].mxu1 %v1220_v30  ;;  %v270_v40 = vld [vmem:[%s2563_s2 + $0x58] sm:$0xff]  ;;  %v423_v43 = vld [vmem:[%s2565_s4 + $0x68] sm:$0xff]  ;;  %v424_v45 = vld [vmem:[%s2565_s4 + $0x70] sm:$0xff]  ;;  %v665_v20 = vsub.s32 0, %v664_v17 }
  0x25   :  { %1176 = vmatprep.mubr.bf16.mxu0 %v1221_v31  ;;  %1184 = vmatprep.mubr.bf16.mxu1 %v1222_v32  ;;  %v272_v44 = vld [vmem:[%s2563_s2 + $0x68] sm:$0xff]  ;;  %v273_v46 = vld [vmem:[%s2563_s2 + $0x70] sm:$0xff]  ;;  %v425_v47 = vld [vmem:[%s2565_s4 + $0x78] sm:$0xff] }
  0x26   :  { %v274_v48 = vld [vmem:[%s2563_s2 + $0x78] sm:$0xff]  ;;  %v495_v49 = vld [vmem:[%s2567_s6] sm:$0xff]  ;;  %v496_v50 = vld [vmem:[%s2567_s6 + $0x8] sm:$0xff] }
  0x27   :  { %455 = vperm.xlu1 %1208, %v419_v33   ;;  %323 = vperm.xlu0 %1207, %v268_v34   ;;  %v498_v51 = vld [vmem:[%s2567_s6 + $0x18] sm:$0xff]  ;;  %v497_v52 = vld [vmem:[%s2567_s6 + $0x10] sm:$0xff]  ;;  %v500_v53 = vld [vmem:[%s2567_s6 + $0x28] sm:$0xff] }
  0x28   :  { %v499_v54 = vld [vmem:[%s2567_s6 + $0x20] sm:$0xff]  ;;  %v501_v55 = vld [vmem:[%s2567_s6 + $0x30] sm:$0xff]  ;;  %v502_v57 = vld [vmem:[%s2567_s6 + $0x38] sm:$0xff] }
  0x29   :  { %v503_v56 = vld [vmem:[%s2567_s6 + $0x40] sm:$0xff]  ;;  %v505_v58 = vld [vmem:[%s2567_s6 + $0x50] sm:$0xff]  ;;  %v504_v59 = vld [vmem:[%s2567_s6 + $0x48] sm:$0xff] }
  0x2a   :  { %v660_v16 = vld [vmem:[%s2569_s8] sm:$0x1] }
  0x2b   :  { %458 = vperm.xlu1 %1208, %v420_v35   ;;  %328 = vperm.xlu0 %1207, %v269_v36   ;;  %vm661_vm0 = vcmp.ne.s32.totalorder %v660_v16, 0  ;;  %v1592_v27 = vld [vmem:[%s2566_s5] ss:$0 sm:$0xff]  ;;  %v508_v35 = vld [vmem:[%s2567_s6 + $0x68] sm:$0xff] }
  0x2c   :  { %1177 = vmatmul.mubr.bf16.gmra.mrb[4].mxu0 %v1223_v37  ;;  %1185 = vmatmul.mubr.bf16.gmra.mrb[4].mxu1 %v1224_v38  ;;  %v662_v23 = vsel %vm661_vm0, 1, %v1313_v2  ;;  %v1597_v28 = vld [vmem:[%s2564_s3] ss:$0 sm:$0xff] }
  0x2d   :  { %v1583_v24 = vrot.slane %v662_v23, %v665_v20  ;;  %v507_v31 = vld [vmem:[%s2567_s6 + $0x60] sm:$0xff] }
  0x2f   :  { %461 = vperm.xlu1 %1208, %v421_v39   ;;  %333 = vperm.xlu0 %1207, %v270_v40   ;;  %vm667_vm1 = vcmp.eq.s32.totalorder %v1583_v24, 1  ;;  %v506_v24 = vld [vmem:[%s2567_s6 + $0x58] sm:$0xff] }
  0x33   :  { %464 = vperm.xlu1 %1208, %v422_v41   ;;  %338 = vperm.xlu0 %1207, %v271_v42  }
  0x37   :  { %467 = vperm.xlu1 %1208, %v423_v43   ;;  %343 = vperm.xlu0 %1207, %v272_v44  }
  0x3b   :  { %470 = vperm.xlu1 %1208, %v424_v45   ;;  %348 = vperm.xlu0 %1207, %v273_v46  }
  0x3f   :  { %473 = vperm.xlu1 %1208, %v425_v47   ;;  %353 = vperm.xlu0 %1207, %v274_v48  }
  0x43   :  { %513 = vperm.xlu1 %1208, %v495_v49   ;;  %516 = vperm.xlu0 %1207, %v496_v50  }
  0x47   :  { %522 = vperm.xlu1 %1208, %v498_v51   ;;  %519 = vperm.xlu0 %1207, %v497_v52  }
  0x4b   :  { %528 = vperm.xlu1 %1208, %v500_v53   ;;  %525 = vperm.xlu0 %1207, %v499_v54  }
  0x4f   :  { %531 = vperm.xlu1 %1208, %v501_v55   ;;  %537 = vperm.xlu0 %1207, %v503_v56  }
  0x53   :  { %534 = vperm.xlu1 %1208, %v502_v57   ;;  %543 = vperm.xlu0 %1207, %v505_v58  }
  0x57   :  { %540 = vperm.xlu1 %1208, %v504_v59  }
  0x81   :  { %v1545_v60 = vpop.permute.xlu1 %428 }
  0x82   :  { %v279_v61 = vpop.permute.xlu0 %278  ;;  %vm2575_vm9 = vcmp.eq.s32.totalorder %v1545_v60, %v1592_v27 }
  0x83   :  { %vm644_vm12 = vmxor %vm2575_vm9, %vm1314_vm3  ;;  %v362_v40 = vadd.f32 %v1597_v28, %v279_v61 }
  0x86   :  { %v1547_v62 = vpop.permute.xlu1 %431  ;;  %v284_v63 = vpop.permute.xlu0 %283 }
  0x87   :  { %vm2574_vm10 = vcmp.eq.s32.totalorder %v1547_v62, %v1592_v27  ;;  %v363_v41 = vadd.f32 %v1597_v28, %v284_v63 }
  0x88   :  { %vm1650_vm14 = vmxor %vm2574_vm10, %vm1314_vm3 }
  0x89   :  { %vm1705_vm9 = vmand %vm1650_vm14, %vm667_vm1 }
  0x8a   :  { %v1549_v0 = vpop.permute.xlu1 %434  ;;  %v289_v1 = vpop.permute.xlu0 %288 }
  0x8b   :  { %vm2580_vm11 = vcmp.eq.s32.totalorder %v1549_v0, %v1592_v27  ;;  %v364_v42 = vadd.f32 %v1597_v28, %v289_v1 }
  0x8c   :  { %vm646_vm15 = vmxor %vm2580_vm11, %vm1314_vm3 }
  0x8e   :  { %v1551_v3 = vpop.permute.xlu1 %437  ;;  %v1553_v4 = vpop.permute.xlu0 %293 }
  0x8f   :  { %vm2573_vm13 = vcmp.eq.s32.totalorder %v1551_v3, %v1592_v27  ;;  %v365_v48 = vadd.f32 %v1597_v28, %v1553_v4 }
  0x90   :  { %vm647_vm0 = vmxor %vm2573_vm13, %vm1314_vm3 }
  0x91   :  { %vm1678_vm13 = vmand %vm646_vm15, %vm667_vm1 }
  0x92   :  { %v1555_v5 = vpop.permute.xlu1 %440  ;;  %v1557_v6 = vpop.permute.xlu0 %298  ;;  %vm1697_vm10 = vmand %vm647_vm0, %vm667_vm1 }
  0x96   :  { %v1559_v7 = vpop.permute.xlu1 %443  ;;  %v1561_v8 = vpop.permute.xlu0 %303 }
  0x97   :  { %vm2579_vm15 = vcmp.eq.s32.totalorder %v1559_v7, %v1592_v27 }
  0x9a   :  { %v1563_v9 = vpop.permute.xlu1 %446  ;;  %v1565_v10 = vpop.permute.xlu0 %308 }
  0x9b   :  { %vm2592_vm14 = vcmp.eq.s32.totalorder %v1563_v9, %v1592_v27 }
  0x9e   :  { %v1567_v11 = vpop.permute.xlu1 %449  ;;  %v1569_v12 = vpop.permute.xlu0 %313 }
  0xa2   :  { %v1571_v14 = vpop.permute.xlu1 %452  ;;  %v319_v15 = vpop.permute.xlu0 %318 }
  0xa3   :  { %v370_v56 = vadd.f32 %v1597_v28, %v319_v15 }
  0xa6   :  { %v1576_v18 = vpop.permute.xlu1 %455  ;;  %v1578_v19 = vpop.permute.xlu0 %323 }
  0xaa   :  { %v1580_v21 = vpop.permute.xlu1 %458  ;;  %v329_v22 = vpop.permute.xlu0 %328 }
  0xab   :  { %v372_v50 = vadd.f32 %v1597_v28, %v329_v22 }
  0xae   :  { %v1585_v25 = vpop.permute.xlu1 %461  ;;  %v1587_v26 = vpop.permute.xlu0 %333 }
  0xaf   :  { %2593 = vst [vmem:[#allocation5_spill] sm:$0xff] %v1585_v25  ;;  %vm2590_vm11 = vcmp.eq.s32.totalorder %v1585_v25, %v1592_v27  ;;  %v373_v39 = vadd.f32 %v1597_v28, %v1587_v26 }
  0xb2   :  { %v1600_v29 = vpop.permute.xlu1 %464  ;;  %v339_v2 = vpop.permute.xlu0 %338 }
  0xb3   :  { %2594 = vst [vmem:[#allocation6_spill] sm:$0xff] %v1600_v29  ;;  %vm2572_vm2 = vcmp.eq.s32.totalorder %v1600_v29, %v1592_v27  ;;  %v1605_v30 = vadd.f32 %v1597_v28, %v339_v2 }
  0xb4   :  { %vm656_vm4 = vmxor %vm2572_vm2, %vm1314_vm3  ;;  %vm2578_vm2 = vcmp.eq.s32.totalorder %v1571_v14, %v1592_v27 }
  0xb5   :  { %vm1613_vm5 = vmand %vm656_vm4, %vm667_vm1  ;;  %vm2576_vm4 = vcmp.eq.s32.totalorder %v1555_v5, %v1592_v27 }
  0xb6   :  { %v1617_v32 = vpop.permute.xlu1 %467  ;;  %v344_v33 = vpop.permute.xlu0 %343  ;;  %vm1726_vm0 = vmxor %vm2578_vm2, %vm1314_vm3 }
  0xb7   :  { %2597 = vst [vmem:[#allocation7_spill] sm:$0xff] %v1617_v32  ;;  %vm2571_vm6 = vcmp.eq.s32.totalorder %v1617_v32, %v1592_v27  ;;  %v1622_v34 = vadd.f32 %v1597_v28, %v344_v33  ;;  %vm1763_vm2 = vmand %vm1726_vm0, %vm667_vm1 }
  0xb8   :  { %vm657_vm7 = vmxor %vm2571_vm6, %vm1314_vm3 }
  0xb9   :  { %vm1630_vm8 = vmand %vm657_vm7, %vm667_vm1  ;;  %vm2577_vm7 = vcmp.eq.s32.totalorder %v1580_v21, %v1592_v27 }
  0xba   :  { %vm1668_vm6 = vmand %vm644_vm12, %vm667_vm1  ;;  %v1674_v38 = vpop.permute.xlu1 %470 }
  0xbb   :  { %2604 = vst [vmem:[#allocation8_spill] sm:$0xff] %v1674_v38  ;;  %vm1689_vm12 = vmxor %vm2576_vm4, %vm1314_vm3 }
  0xbc   :  { %vm1715_vm4 = vmxor %vm2577_vm7, %vm1314_vm3 }
  0xbd   :  { %vm1735_vm7 = vmxor %vm2579_vm15, %vm1314_vm3 }
  0xbe   :  { %vm678_vm15 = vmand %vm1715_vm4, %vm667_vm1 }
  0xbf   :  { %vm1771_vm4 = vmxor %vm2592_vm14, %vm1314_vm3 }
  0xc0   :  { %vm1829_vm0 = vmand %vm1689_vm12, %vm667_vm1  ;;  %vm2591_vm12 = vcmp.eq.s32.totalorder %v1567_v11, %v1592_v27 }
  0xf7   :  { %v1174_v44 = vpop.f32.mrb[0].mxu0  ;;  %v1182_v45 = vpop.f32.mrb[0].mxu1 }
  0xf8   :  { %v380_v51 = vmul.f32 2.0, %v1174_v44  ;;  %v388_v52 = vmul.f32 2.0, %v1182_v45  ;;  %v196_v53 = vpop.f32.mrb[1].mxu0  ;;  %v228_v54 = vpop.f32.mrb[1].mxu1 }
  0xf9   :  { %v378_v57 = vmul.f32 2.0, %v196_v53  ;;  %v386_v58 = vmul.f32 2.0, %v228_v54  ;;  %v1175_v59 = vpop.f32.mrb[2].mxu0  ;;  %v1183_v61 = vpop.f32.mrb[2].mxu1  ;;  %v367_v54 = vadd.f32 %v1597_v28, %v1561_v8  ;;  %v510_v8 = vld [vmem:[%s2567_s6 + $0x78] sm:$0xff] }
  0xfa   :  { %v381_v1 = vmul.f32 2.0, %v1175_v59  ;;  %v199_v4 = vpop.f32.mrb[3].mxu0  ;;  %v231_v13 = vpop.f32.mrb[3].mxu1  ;;  %v1741_v16 = vsub.f32 %v372_v50, %v388_v52  ;;  %v1743_v15 = vsub.f32 %v364_v42, %v380_v51  ;;  %v389_v17 = vmul.f32 2.0, %v1183_v61 }
  0xfb   :  { %v379_v20 = vmul.f32 2.0, %v199_v4  ;;  %v1749_v22 = vsub.f32 %v370_v56, %v386_v58  ;;  %v1751_v23 = vsub.f32 %v362_v40, %v378_v57  ;;  %v387_v2 = vmul.f32 2.0, %v231_v13  ;;  %v349_v44 = vpop.permute.xlu0 %348  ;;  %v1795_v52 = vpop.permute.xlu1 %473 }
  0xfc   :  { %v694_v33 = vsel %vm678_vm15, %v1741_v16, inf  ;;  %v686_v36 = vsel %vm1678_vm13, %v1743_v15, inf  ;;  %v366_v50 = vadd.f32 %v1597_v28, %v1557_v6  ;;  %vm2623_vm13 = vcmp.eq.s32.totalorder %v1576_v18, %v1592_v27  ;;  %2626 = vst [vmem:[#allocation9_spill] sm:$0xff] %v1795_v52 }
  0xfd   :  { %720 = vmin.xlane.f32.xlu1 %v694_v33  ;;  %704 = vmin.xlane.f32.xlu0 %v686_v36  ;;  %v692_v45 = vsel %vm1763_vm2, %v1749_v22, inf  ;;  %v684_v49 = vsel %vm1668_vm6, %v1751_v23, inf  ;;  %vm1789_vm15 = vmxor %vm2623_vm13, %vm1314_vm3  ;;  %v371_v51 = vadd.f32 %v1597_v28, %v1578_v19  ;;  %v1797_v53 = vsub.f32 %v365_v48, %v381_v1 }
  0xfe   :  { %v1799_v37 = vsub.f32 %v363_v41, %v379_v20  ;;  %vm1805_vm2 = vmand %vm1735_vm7, %vm667_vm1  ;;  %v368_v19 = vadd.f32 %v1597_v28, %v1565_v10  ;;  %vm2589_vm7 = vcmp.eq.s32.totalorder %v1674_v38, %v1592_v27  ;;  %v1823_v56 = vsub.f32 %v373_v39, %v389_v17 }
  0xff   :  { %vm1817_vm6 = vmxor %vm2590_vm11, %vm1314_vm3  ;;  %v1178_v48 = vpop.f32.mrb[4].mxu0  ;;  %v1186_v55 = vpop.f32.mrb[4].mxu1  ;;  %v687_v59 = vsel %vm1697_vm10, %v1797_v53, inf  ;;  %v1847_v63 = vsub.f32 %v371_v51, %v387_v2  ;;  %vm2586_vm10 = vcmp.eq.s32.totalorder %v1795_v52, %v1592_v27  ;;  %v1968_v39 = vmax.f32 %v1743_v15, 1e-12 }
 0x100   :  { %v384_v10 = vmul.f32 2.0, %v1178_v48  ;;  %v212_v57 = vpop.f32.mrb[5].mxu0  ;;  %v244_v58 = vpop.f32.mrb[5].mxu1  ;;  %v685_v61 = vsel %vm1705_vm9, %v1799_v37, inf  ;;  %vm1843_vm13 = vmand %vm1771_vm4, %vm667_vm1  ;;  %v392_v46 = vmul.f32 2.0, %v1186_v55  ;;  %v369_v48 = vadd.f32 %v1597_v28, %v1569_v12 }
 0x101   :  { %v382_v1 = vmul.f32 2.0, %v212_v57  ;;  %716 = vmin.xlane.f32.xlu1 %v692_v45  ;;  %v1187_v47 = vpop.f32.mrb[6].mxu1  ;;  %700 = vmin.xlane.f32.xlu0 %v684_v49  ;;  %v1179_v4 = vpop.f32.mrb[6].mxu0  ;;  %vm1857_vm9 = vmand %vm1789_vm15, %vm667_vm1  ;;  %v390_v17 = vmul.f32 2.0, %v244_v58  ;;  %v376_v45 = vadd.f32 %v1597_v28, %v349_v44 }
 0x102   :  { %v393_v20 = vmul.f32 2.0, %v1187_v47  ;;  %v385_v2 = vmul.f32 2.0, %v1179_v4  ;;  %v215_v33 = vpop.f32.mrb[7].mxu0  ;;  %v247_v36 = vpop.f32.mrb[7].mxu1  ;;  %vm1865_vm4 = vmand %vm1817_vm6, %vm667_vm1  ;;  %v1869_v40 = vsub.f32 %v368_v19, %v384_v10  ;;  %v693_v10 = vsel %vm1857_vm9, %v1847_v63, inf }
 0x103   :  { %vm1875_vm15 = vmxor %vm2589_vm7, %vm1314_vm3  ;;  %v354_v49 = vpop.permute.xlu0 %353  ;;  %v383_v26 = vmul.f32 2.0, %v215_v33  ;;  %v391_v51 = vmul.f32 2.0, %v247_v36  ;;  %v695_v41 = vsel %vm1865_vm4, %v1823_v56, inf  ;;  %v398_v47 = vsub.f32 %v366_v50, %v382_v1  ;;  %v509_v1 = vld [vmem:[%s2567_s6 + $0x70] sm:$0xff] }
 0x104   :  { %vm1887_vm6 = vmxor %vm2591_vm12, %vm1314_vm3  ;;  %v377_v44 = vadd.f32 %v1597_v28, %v354_v49  ;;  %v690_v55 = vsel %vm1843_vm13, %v1869_v40, inf  ;;  %v1913_v28 = vsub.f32 %v376_v45, %v392_v46  ;;  %v401_v4 = vsub.f32 %v369_v48, %v385_v2 }
 0x105   :  { %vm1904_vm4 = vmxor %vm2586_vm10, %vm1314_vm3  ;;  %v1908_v58 = vsub.f32 %v367_v54, %v383_v26  ;;  %v1911_v12 = vsub.f32 %v1622_v34, %v391_v51  ;;  %706 = vmin.xlane.f32.xlu0 %v687_v59  ;;  %702 = vmin.xlane.f32.xlu1 %v685_v61  ;;  %v1926_v54 = vsub.f32 %v1605_v30, %v390_v17  ;;  %v688_v50 = vsel %vm1829_vm0, %v398_v47, inf  ;;  %v514_v17 = vpop.permute.xlu1 %513 }
 0x106   :  { %vm1919_vm13 = vmand %vm1875_vm15, %vm667_vm1  ;;  %v1923_v13 = vsub.f32 %v377_v44, %v393_v20  ;;  %v860_v36 = vmax.f32 %v1751_v23, 1e-12  ;;  %v1971_v45 = vmax.f32 %v1799_v37, 1e-12  ;;  %v1975_v51 = vmax.f32 %v1797_v53, 1e-12 }
 0x107   :  { %2645 = vst [vmem:[#allocation10_spill] sm:$0xff] %v1911_v12  ;;  %v698_v34 = vsel %vm1919_vm13, %v1913_v28, inf  ;;  %vm675_vm3 = vmand %vm1887_vm6, %vm667_vm1  ;;  %v689_v59 = vsel %vm1805_vm2, %v1908_v58, inf  ;;  %v696_v46 = vsel %vm1613_vm5, %v1926_v54, inf  ;;  %v697_v6 = vsel %vm1630_vm8, %v1911_v12, inf  ;;  %v517_v20 = vpop.permute.xlu0 %516 }
 0x108   :  { %2648 = vst [vmem:[#allocation11_spill] sm:$0xff] %v1923_v13  ;;  %v691_v61 = vsel %vm675_vm3, %v401_v4, inf  ;;  %vm683_vm9 = vmand %vm1904_vm4, %vm667_vm1  ;;  %1225 = vrsqrt.f32 %v860_v36  ;;  %v1981_v23 = vmax.f32 %v1869_v40, 1e-12  ;;  %v1984_v19 = vmax.f32 %v1749_v22, 1e-12 }
 0x109   :  { %722 = vmin.xlane.f32.xlu0 %v695_v41  ;;  %712 = vmin.xlane.f32.xlu1 %v690_v55  ;;  %v699_v30 = vsel %vm683_vm9, %v1923_v13, inf  ;;  %v523_v2 = vpop.permute.xlu1 %522  ;;  %1227 = vrsqrt.f32 %v1968_v39  ;;  %v1978_v41 = vmax.f32 %v398_v47, 1e-12  ;;  %v1989_v37 = vld [vmem:[%s2568_s7] ss:$0 sm:$0xff]  ;;  %vm878_vm1 = vcmp.eq.f32.partialorder %v860_v36, inf }
 0x10a   :  { %1229 = vrsqrt.f32 %v1971_v45  ;;  %v1992_v48 = vmax.f32 %v1741_v16, 1e-12  ;;  %v1995_v44 = vmax.f32 %v401_v4, 1e-12  ;;  %v1999_v55 = vmax.f32 %v1908_v58, 1e-12 }
 0x10b   :  { %v520_v33 = vpop.permute.xlu0 %519  ;;  %1231 = vrsqrt.f32 %v1975_v51  ;;  %v2007_v16 = vmul.u32 %v1989_v37, %v517_v20  ;;  %v2010_v57 = vmul.u32 %v1989_v37, %v523_v2  ;;  %v2017_v47 = vmax.f32 %v1847_v63, 1e-12  ;;  %s1315_s7 = smov [#allocation2]  }
 0x10c   :  { %1233 = vrsqrt.f32 %v1978_v41  ;;  %v2014_v43 = vmul.u32 %v1989_v37, %v520_v33  ;;  %vm892_vm5 = vcmp.eq.f32.partialorder %v1968_v39, inf  ;;  %vm880_vm8 = vcmp.eq.f32.partialorder %v860_v36, 0.0  ;;  %s1113_s26 = sshll.u32 %s1315_s7, 4  ;;  %s1114_s26 = int_to_ptr.vmem [resolvable:$true] %s1113_s26 }
 0x10d   :  { %718 = vmin.xlane.f32.xlu0 %v693_v10  ;;  %728 = vmin.xlane.f32.xlu1 %v698_v34  ;;  %v529_v42 = vpop.permute.xlu1 %528  ;;  %1235 = vrsqrt.f32 %v1981_v23  ;;  %v2003_v10 = vmul.u32 %v1989_v37, %v514_v17  ;;  %v881_v17 = vand.u32 2147483648, %v860_v36  ;;  %v2048_v33 = vmax.f32 %v1823_v56, 1e-12  ;;  %s1289_s0 = scalar_lea.vmem %s1114_s26, 16  ;;  %s1293_s27 = scalar_lea.vmem %s1114_s26, 32 }
 0x10e   :  { %1237 = vrsqrt.f32 %v1984_v19  ;;  %vm885_vm2 = vcmp.eq.f32.partialorder %v1971_v45, inf  ;;  %vm887_vm0 = vcmp.eq.f32.partialorder %v1971_v45, 0.0  ;;  %vm894_vm15 = vcmp.eq.f32.partialorder %v1968_v39, 0.0  ;;  %p1290_p0 = scmp.ne.s32.totalorder %s1114_s26, %s1289_s0  ;;  %p1294_p1 = scmp.lt.s32.totalorder %s1114_s26, %s1114_s26 }
 0x10f   :  { %v526_v49 = vpop.permute.xlu0 %525  ;;  %1239 = vrsqrt.f32 %v1992_v48  ;;  %vm899_vm6 = vcmp.eq.f32.partialorder %v1975_v51, inf  ;;  %vm906_vm4 = vcmp.eq.f32.partialorder %v1978_v41, inf  ;;  %vm920_vm13 = vcmp.eq.f32.partialorder %v1981_v23, inf  ;;  %p1295_p2 = scmp.lt.s32.totalorder %s1293_s27, %s1289_s0 }
 0x110   :  { %1241 = vrsqrt.f32 %v1995_v44  ;;  %vm901_vm3 = vcmp.eq.f32.partialorder %v1975_v51, 0.0  ;;  %vm908_vm9 = vcmp.eq.f32.partialorder %v1978_v41, 0.0  ;;  %vm929_vm10 = vcmp.eq.f32.partialorder %v1995_v44, 0.0 }
 0x111   :  { %708 = vmin.xlane.f32.xlu1 %v688_v50  ;;  %714 = vmin.xlane.f32.xlu0 %v691_v61  ;;  %v532_v26 = vpop.permute.xlu1 %531  ;;  %v2024_v50 = vmul.u32 %v1989_v37, %v526_v49  ;;  %1243 = vrsqrt.f32 %v1999_v55  ;;  %p1296_p3 = por %p1295_p2, %p1294_p1 }
 0x112   :  { %v1226_v40 = vpop.eup %1225  ;;  %1245 = vrsqrt.f32 %v2017_v47 }
 0x113   :  { %v538_v15 = vpop.permute.xlu0 %537  ;;  %v1228_v22 = vpop.eup %1227  ;;  %v877_v4 = vmul.f32 %v1226_v40, %v860_v36  ;;  %p1297_p4 = pnand %p1296_p3, %p1290_p0 }
 0x114   :  { %v1230_v34 = vpop.eup %1229  ;;  %v891_v61 = vmul.f32 %v1228_v22, %v1968_v39  ;;  %v2032_v63 = vmul.u32 %v1989_v37, %v538_v15  ;;  %v888_v15 = vand.u32 2147483648, %v1971_v45 }
 0x115   :  { %730 = vmin.xlane.f32.xlu0 %v699_v30  ;;  %v535_v53 = vpop.permute.xlu1 %534  ;;  %v2029_v30 = vmul.u32 %v1989_v37, %v532_v26 }
 0x116   :  { %v893_v20 = vsel %vm892_vm5, %v1968_v39, %v891_v61  ;;  %vm934_vm5 = vcmp.eq.f32.partialorder %v1984_v19, inf }
 0x117   :  { %v544_v58 = vpop.permute.xlu0 %543  ;;  %vm586_vm11 = vcmp.eq.s32.totalorder %v2029_v30, 3 }
 0x119   :  { %710 = vmin.xlane.f32.xlu0 %v689_v59  ;;  %v2021_v59 = vmul.u32 %v1989_v37, %v529_v42  ;;  %v895_v42 = vand.u32 2147483648, %v1968_v39  ;;  %v909_v39 = vand.u32 2147483648, %v1978_v41 }
 0x11b   :  { %v2059_v22 = vsel %vm894_vm15, %v895_v42, %v893_v20  ;;  %vm927_vm15 = vcmp.eq.f32.partialorder %v1995_v44, inf }
 0x122   :  { %546 = vperm.xlu1 %1208, %v506_v24   ;;  %v2038_v24 = vmul.u32 %v1989_v37, %v544_v58  ;;  %v902_v58 = vand.u32 2147483648, %v1975_v51 }
 0x12f   :  { %549 = vperm.xlu0 %1207, %v507_v31   ;;  %v879_v31 = vsel %vm878_vm1, %v860_v36, %v877_v4  ;;  %vm922_vm1 = vcmp.eq.f32.partialorder %v1981_v23, 0.0 }
 0x130   :  { %v2053_v26 = vsel %vm880_vm8, %v881_v17, %v879_v31  ;;  %v923_v31 = vand.u32 2147483648, %v1981_v23  ;;  %vm936_vm8 = vcmp.eq.f32.partialorder %v1984_v19, 0.0 }
 0x146   :  { %724 = vmin.xlane.f32.xlu1 %v696_v46  ;;  %v541_v46 = vpop.permute.xlu1 %540 }
 0x14e   :  { %726 = vmin.xlane.f32.xlu0 %v697_v6  ;;  %v2035_v6 = vmul.u32 %v1989_v37, %v535_v53 }
 0x157   :  { %552 = vperm.xlu1 %1208, %v508_v35   ;;  %v884_v35 = vmul.f32 %v1230_v34, %v1971_v45 }
 0x159   :  { %v886_v56 = vsel %vm885_vm2, %v1971_v45, %v884_v35  ;;  %v937_v35 = vand.u32 2147483648, %v1984_v19  ;;  %vm948_vm2 = vcmp.eq.f32.partialorder %v1992_v48, inf }
 0x15a   :  { %v2078_v20 = vsel %vm887_vm0, %v888_v15, %v886_v56  ;;  %vm950_vm0 = vcmp.eq.f32.partialorder %v1992_v48, 0.0 }
 0x15b   :  { %558 = vperm.xlu1 %1208, %v510_v8   ;;  %v1232_v8 = vpop.eup %1231 }
 0x15c   :  { %v1234_v2 = vpop.eup %1233  ;;  %v898_v42 = vmul.f32 %v1232_v8, %v1975_v51 }
 0x15d   :  { %v1236_v49 = vpop.eup %1235 }
 0x15e   :  { %v1238_v36 = vpop.eup %1237  ;;  %v919_v32 = vmul.f32 %v1236_v49, %v1981_v23  ;;  %v951_v49 = vand.u32 2147483648, %v1992_v48 }
 0x15f   :  { %v1240_v4 = vpop.eup %1239  ;;  %v933_v38 = vmul.f32 %v1238_v36, %v1984_v19 }
 0x160   :  { %v947_v29 = vmul.f32 %v1240_v4, %v1992_v48 }
 0x164   :  { %555 = vperm.xlu0 %1207, %v509_v1   ;;  %v2044_v1 = vmul.u32 %v1989_v37, %v541_v46  ;;  %v1242_v46 = vpop.eup %1241 }
 0x165   :  { %v1244_v17 = vpop.eup %1243  ;;  %v926_v8 = vmul.f32 %v1242_v46, %v1995_v44  ;;  %v921_v46 = vsel %vm920_vm13, %v1981_v23, %v919_v32  ;;  %v930_v32 = vand.u32 2147483648, %v1995_v44  ;;  %vm941_vm13 = vcmp.eq.f32.partialorder %v2017_v47, inf }
 0x166   :  { %v2094_v15 = vmul.f32 %v1244_v17, %v1999_v55  ;;  %v935_v17 = vsel %vm934_vm5, %v1984_v19, %v933_v38  ;;  %vm580_vm5 = vcmp.eq.s32.totalorder %v2003_v10, 3 }
 0x167   :  { %v928_v12 = vsel %vm927_vm15, %v1995_v44, %v926_v8 }
 0x168   :  { %v2155_v23 = vsel %vm929_vm10, %v930_v32, %v928_v12 }
 0x18a   :  { %v721_v53 = vpop.xlane.xlu1 %720  ;;  %v705_v40 = vpop.xlane.xlu0 %704 }
 0x18b   :  { %v2063_v34 = vmax.f32 %v721_v53, 1e-12  ;;  %v2065_v61 = vmax.f32 %v705_v40, 1e-12  ;;  %v905_v53 = vmul.f32 %v1234_v2, %v1978_v41  ;;  %v1246_v2 = vpop.eup %1245 }
 0x18c   :  { %v940_v25 = vmul.f32 %v1246_v2, %v2017_v47  ;;  %v2140_v2 = vsel %vm922_vm1, %v923_v31, %v921_v46  ;;  %vm602_vm1 = vcmp.eq.s32.totalorder %v2029_v30, 6 }
 0x18d   :  { %1247 = vrsqrt.f32 %v2063_v34  ;;  %v907_v36 = vsel %vm906_vm4, %v1978_v41, %v905_v53  ;;  %vm598_vm4 = vcmp.eq.s32.totalorder %v2014_v43, 6  ;;  %v767_v12 = vand.u32 2147483648, %v2065_v61 }
 0x18e   :  { %1249 = vrsqrt.f32 %v2065_v61  ;;  %v717_v40 = vpop.xlane.xlu1 %716  ;;  %v701_v52 = vpop.xlane.xlu0 %700  ;;  %v2136_v8 = vsel %vm908_vm9, %v909_v39, %v907_v36  ;;  %vm766_vm9 = vcmp.eq.f32.partialorder %v2065_v61, 0.0  ;;  %v2164_v19 = vsel %vm941_vm13, %v2017_v47, %v940_v25 }
 0x18f   :  { %v2087_v13 = vmax.f32 %v717_v40, 1e-12  ;;  %v2089_v45 = vmax.f32 %v701_v52, 1e-12  ;;  %v900_v52 = vsel %vm899_vm6, %v1975_v51, %v898_v42  ;;  %v949_v42 = vsel %vm948_vm2, %v1992_v48, %v947_v29 }
 0x190   :  { %vm582_vm6 = vcmp.eq.s32.totalorder %v2014_v43, 3  ;;  %v2132_v29 = vsel %vm901_vm3, %v902_v58, %v900_v52  ;;  %vm596_vm2 = vcmp.eq.s32.totalorder %v2003_v10, 6  ;;  %v2149_v51 = vsel %vm936_vm8, %v937_v35, %v935_v17 }
 0x191   :  { %1251 = vrsqrt.f32 %v2087_v13  ;;  %v952_v41 = vsel %vm950_vm0, %v951_v49, %v949_v42  ;;  %vm764_vm3 = vcmp.eq.f32.partialorder %v2065_v61, inf  ;;  %vm606_vm8 = vcmp.eq.s32.totalorder %v2038_v24, 6 }
 0x192   :  { %1253 = vrsqrt.f32 %v2089_v45  ;;  %v707_v56 = vpop.xlane.xlu0 %706  ;;  %v703_v4 = vpop.xlane.xlu1 %702  ;;  %vm820_vm10 = vcmp.eq.f32.partialorder %v2063_v34, inf  ;;  %vm822_vm0 = vcmp.eq.f32.partialorder %v2063_v34, 0.0  ;;  %vm750_vm15 = vcmp.eq.f32.partialorder %v2089_v45, inf }
 0x193   :  { %v2117_v40 = vmax.f32 %v707_v56, 1e-12  ;;  %v2119_v53 = vmax.f32 %v703_v4, 1e-12  ;;  %1255 = vrsqrt.f32 %v2048_v33  ;;  %vm752_vm7 = vcmp.eq.f32.partialorder %v2089_v45, 0.0 }
 0x194   :  { %v823_v44 = vand.u32 2147483648, %v2063_v34  ;;  %v753_v52 = vand.u32 2147483648, %v2089_v45  ;;  %vm806_vm12 = vcmp.eq.f32.partialorder %v2087_v13, inf  ;;  %vm808_vm14 = vcmp.eq.f32.partialorder %v2087_v13, 0.0 }
 0x195   :  { %1257 = vrsqrt.f32 %v2117_v40  ;;  %vm943_vm13 = vcmp.eq.f32.partialorder %v2017_v47, 0.0 }
 0x196   :  { %1259 = vrsqrt.f32 %v2119_v53  ;;  %v2145_v56 = vpop.xlane.xlu0 %722  ;;  %v713_v4 = vpop.xlane.xlu1 %712 }
 0x197   :  { %v1248_v58 = vpop.eup %1247  ;;  %v2157_v39 = vmax.f32 %v713_v4, 1e-12 }
 0x198   :  { %v1250_v31 = vpop.eup %1249  ;;  %v819_v48 = vmul.f32 %v1248_v58, %v2063_v34 }
 0x199   :  { %v763_v25 = vmul.f32 %v1250_v31, %v2065_v61  ;;  %1261 = vrsqrt.f32 %v2157_v39 }
 0x19a   :  { %v719_v35 = vpop.xlane.xlu0 %718  ;;  %v2179_v49 = vpop.xlane.xlu1 %728  ;;  %v821_v36 = vsel %vm820_vm10, %v2063_v34, %v819_v48  ;;  %v809_v48 = vand.u32 2147483648, %v2087_v13  ;;  %vm759_vm10 = vcmp.eq.f32.partialorder %v2119_v53, 0.0 }
 0x19b   :  { %v1252_v46 = vpop.eup %1251  ;;  %v2184_v17 = vmax.f32 %v719_v35, 1e-12  ;;  %v765_v42 = vsel %vm764_vm3, %v2065_v61, %v763_v25  ;;  %v824_v32 = vsel %vm822_vm0, %v823_v44, %v821_v36  ;;  %vm757_vm3 = vcmp.eq.f32.partialorder %v2119_v53, inf  ;;  %vm2221_vm0 = vmor %vm582_vm6, %vm598_vm4 }
 0x19c   :  { %v1254_v4 = vpop.eup %1253  ;;  %v768_v58 = vsel %vm766_vm9, %v767_v12, %v765_v42  ;;  %v805_v31 = vmul.f32 %v1252_v46, %v2087_v13  ;;  %v998_v25 = vsub.f32 %v952_v41, %v824_v32  ;;  %v760_v41 = vand.u32 2147483648, %v2119_v53  ;;  %vm2241_vm6 = vmor %vm580_vm5, %vm596_vm2 }
 0x19d   :  { %v749_v35 = vmul.f32 %v1254_v4, %v2089_v45  ;;  %v990_v34 = vsub.f32 %v2059_v22, %v768_v58  ;;  %v2203_v44 = vpop.eup %1255  ;;  %1263 = vrsqrt.f32 %v2184_v17  ;;  %vm771_vm9 = vcmp.eq.f32.partialorder %v2117_v40, inf }
 0x19e   :  { %v709_v61 = vpop.xlane.xlu1 %708  ;;  %v715_v12 = vpop.xlane.xlu0 %714  ;;  %v1014_v36 = vadd.f32 0.3, %v998_v25  ;;  %v2228_v25 = vmax.f32 %v2145_v56, 1e-12  ;;  %v807_v43 = vsel %vm806_vm12, %v2087_v13, %v805_v31  ;;  %vm773_vm4 = vcmp.eq.f32.partialorder %v2117_v40, 0.0 }
 0x19f   :  { %v1258_v46 = vpop.eup %1257  ;;  %v2210_v42 = vmax.f32 %v709_v61, 1e-12  ;;  %v2212_v32 = vmax.f32 %v715_v12, 1e-12  ;;  %v751_v22 = vsel %vm750_vm15, %v2089_v45, %v749_v35  ;;  %v1006_v58 = vadd.f32 0.3, %v990_v34 }
 0x1a0   :  { %v1260_v38 = vpop.eup %1259  ;;  %v754_v35 = vsel %vm752_vm7, %v753_v52, %v751_v22  ;;  %v770_v61 = vmul.f32 %v1258_v46, %v2117_v40  ;;  %vm2653_vm7 = vcmp.eq.s32.totalorder %v1549_v0, %v1592_v27  ;;  %v810_v46 = vsel %vm808_vm14, %v809_v48, %v807_v43 }
 0x1a1   :  { %1265 = vrsqrt.f32 %v2210_v42  ;;  %v988_v56 = vsub.f32 %v2053_v26, %v754_v35  ;;  %v756_v45 = vmul.f32 %v1260_v38, %v2119_v53  ;;  %v1022_v52 = vmax.f32 %v1006_v58, 0.0  ;;  %vm630_vm12 = vmand %vm2653_vm7, %vm2221_vm0 }
 0x1a2   :  { %1267 = vrsqrt.f32 %v2212_v32  ;;  %v2248_v12 = vpop.xlane.xlu0 %730  ;;  %v772_v10 = vsel %vm771_vm9, %v2117_v40, %v770_v61  ;;  %v774_v26 = vand.u32 2147483648, %v2117_v40  ;;  %vm2654_vm5 = vcmp.eq.s32.totalorder %v2038_v24, 3 }
 0x1a3   :  { %v1004_v38 = vadd.f32 0.3, %v988_v56  ;;  %v758_v31 = vsel %vm757_vm3, %v2119_v53, %v756_v45  ;;  %vm2269_vm2 = vmor %vm2654_vm5, %vm606_vm8  ;;  %v1030_v22 = vmax.f32 %v1014_v36, 0.0  ;;  %v1262_v4 = vpop.eup %1261  ;;  %vm2657_vm15 = vcmp.eq.s32.totalorder %v1545_v60, %v1592_v27 }
 0x1a4   :  { %vm2278_vm0 = vmand %vm2657_vm15, %vm2241_vm6  ;;  %v761_v13 = vsel %vm759_vm10, %v760_v41, %v758_v31  ;;  %v1038_v48 = vsel %vm630_vm12, %v1022_v52, 0.0  ;;  %v775_v24 = vsel %vm773_vm4, %v774_v26, %v772_v10  ;;  %v2660_v58 = vand.u32 2147483648, %v2017_v47 }
 0x1a5   :  { %1269 = vrsqrt.f32 %v2228_v25  ;;  %v1020_v35 = vmax.f32 %v1004_v38, 0.0  ;;  %vm2661_vm14 = vcmp.eq.s32.totalorder %v2007_v16, 6  ;;  %vm2662_vm8 = vcmp.eq.s32.totalorder %v2007_v16, 3 }
 0x1a6   :  { %v2289_v36 = vsel %vm943_vm13, %v2660_v58, %v2164_v19  ;;  %vm2296_vm3 = vmor %vm2662_vm8, %vm2661_vm14  ;;  %vm792_vm10 = vcmp.eq.f32.partialorder %v2157_v39, inf  ;;  %vm794_vm9 = vcmp.eq.f32.partialorder %v2157_v39, 0.0  ;;  %vm584_vm6 = vcmp.eq.s32.totalorder %v2024_v50, 3  ;;  %v711_v47 = vpop.xlane.xlu0 %710 }
 0x1a7   :  { %vm600_vm13 = vcmp.eq.s32.totalorder %v2024_v50, 6  ;;  %v989_v53 = vsub.f32 %v2078_v20, %v761_v13  ;;  %v991_v19 = vsub.f32 %v2132_v29, %v775_v24  ;;  %v791_v41 = vmul.f32 %v1262_v4, %v2157_v39  ;;  %v1264_v43 = vpop.eup %1263 }
 0x1a8   :  { %v996_v16 = vsub.f32 %v2149_v51, %v810_v46  ;;  %vm2665_vm7 = vcmp.eq.s32.totalorder %v1580_v21, %v1592_v27  ;;  %vm605_vm5 = vcmp.eq.s32.totalorder %v2044_v1, 6  ;;  %v2315_v61 = vmax.f32 %v711_v47, 1e-12 }
 0x1a9   :  { %vm638_vm12 = vmand %vm2665_vm7, %vm2269_vm2  ;;  %v1036_v20 = vsel %vm2278_vm0, %v1020_v35, 0.0  ;;  %vm2666_vm15 = vcmp.eq.s32.totalorder %v2010_v57, 6  ;;  %vm2667_vm14 = vcmp.eq.s32.totalorder %v2010_v57, 3  ;;  %v795_v21 = vand.u32 2147483648, %v2157_v39 }
 0x1aa   :  { %vm2323_vm8 = vmor %vm2667_vm14, %vm2666_vm15  ;;  %v2328_v51 = vsel %vm638_vm12, %v1030_v22, 0.0  ;;  %vm603_vm7 = vcmp.eq.s32.totalorder %v2035_v6, 6  ;;  %1052 = vadd.xlane.f32.xlu0 %v1036_v20  ;;  %vm2670_vm0 = vcmp.eq.s32.totalorder %v1547_v62, %v1592_v27  ;;  %v1005_v34 = vadd.f32 0.3, %v989_v53 }
 0x1ab   :  { %vm2337_vm4 = vmand %vm2670_vm0, %vm2296_vm3  ;;  %v1007_v56 = vadd.f32 0.3, %v991_v19  ;;  %v793_v45 = vsel %vm792_vm10, %v2157_v39, %v791_v41  ;;  %v1012_v52 = vadd.f32 0.3, %v996_v16  ;;  %1271 = vrsqrt.f32 %v2315_v61 }
 0x1ac   :  { %v796_v10 = vsel %vm794_vm9, %v795_v21, %v793_v45  ;;  %vm2673_vm12 = vcmp.eq.s32.totalorder %v2032_v63, 6  ;;  %vm2674_vm15 = vcmp.eq.s32.totalorder %v2032_v63, 3  ;;  %vm813_vm14 = vcmp.eq.f32.partialorder %v2184_v17, inf  ;;  %v1266_v63 = vpop.eup %1265 }
 0x1ad   :  { %vm2351_vm3 = vmor %vm2674_vm15, %vm2673_vm12  ;;  %vm815_vm0 = vcmp.eq.f32.partialorder %v2184_v17, 0.0  ;;  %v1021_v26 = vmax.f32 %v1005_v34, 0.0  ;;  %vm2677_vm10 = vcmp.eq.s32.totalorder %v1551_v3, %v1592_v27  ;;  %v1023_v39 = vmax.f32 %v1007_v56, 0.0  ;;  %v1268_v22 = vpop.eup %1267 }
 0x1ae   :  { %vm631_vm2 = vmand %vm2677_vm10, %vm2323_vm8  ;;  %v994_v38 = vsub.f32 %v2140_v2, %v796_v10  ;;  %v1028_v31 = vmax.f32 %v1012_v52, 0.0  ;;  %vm778_vm9 = vcmp.eq.f32.partialorder %v2210_v42, inf  ;;  %vm780_vm12 = vcmp.eq.f32.partialorder %v2210_v42, 0.0  ;;  %1056 = vadd.xlane.f32.xlu0 %v1038_v48 }
 0x1af   :  { %v781_v46 = vand.u32 2147483648, %v2210_v42  ;;  %vm2370_vm15 = vmor %vm586_vm11, %vm602_vm1  ;;  %v812_v3 = vmul.f32 %v1264_v43, %v2184_v17  ;;  %v1037_v2 = vsel %vm2337_vm4, %v1021_v26, 0.0  ;;  %v1039_v4 = vsel %vm631_vm2, %v1023_v39, 0.0  ;;  %v1270_v47 = vpop.eup %1269 }
 0x1b0   :  { %v777_v40 = vmul.f32 %v1266_v63, %v2210_v42  ;;  %v1010_v13 = vadd.f32 0.3, %v994_v38  ;;  %vm2680_vm8 = vcmp.eq.s32.totalorder %v1571_v14, %v1592_v27  ;;  %1054 = vadd.xlane.f32.xlu1 %v1037_v2  ;;  %v798_v24 = vmul.f32 %v1268_v22, %v2212_v32  ;;  %vm616_vm10 = vmor %vm584_vm6, %vm600_vm13  ;;  %v547_v63 = vpop.permute.xlu1 %546 }
 0x1b1   :  { %vm636_vm11 = vmand %vm2680_vm8, %vm2351_vm3  ;;  %v814_v58 = vsel %vm813_vm14, %v2184_v17, %v812_v3  ;;  %v816_v48 = vand.u32 2147483648, %v2184_v17  ;;  %vm799_vm1 = vcmp.eq.f32.partialorder %v2212_v32, inf  ;;  %v802_v14 = vand.u32 2147483648, %v2212_v32 }
 0x1b2   :  { %v2383_v30 = vsel %vm636_vm11, %v1028_v31, 0.0  ;;  %v779_v35 = vsel %vm778_vm9, %v2210_v42, %v777_v40  ;;  %v1026_v60 = vmax.f32 %v1010_v13, 0.0  ;;  %vm2681_vm4 = vcmp.eq.s32.totalorder %v1563_v9, %v1592_v27  ;;  %1058 = vadd.xlane.f32.xlu0 %v1039_v4  ;;  %v2692_v4 = vld [vmem:[#allocation5_spill] sm:$0xff] }
 0x1b3   :  { %v782_v53 = vsel %vm780_vm12, %v781_v46, %v779_v35  ;;  %vm634_vm2 = vmand %vm2681_vm4, %vm2370_vm15  ;;  %v800_v19 = vsel %vm799_vm1, %v2212_v32, %v798_v24  ;;  %vm801_vm3 = vcmp.eq.f32.partialorder %v2212_v32, 0.0  ;;  %v817_v41 = vsel %vm815_vm0, %v816_v48, %v814_v58 }
 0x1b4   :  { %v992_v16 = vsub.f32 %v2136_v8, %v782_v53  ;;  %v1042_v20 = vsel %vm634_vm2, %v1026_v60, 0.0  ;;  %v803_v29 = vsel %vm801_vm3, %v802_v14, %v800_v19  ;;  %v997_v42 = vsub.f32 %v2289_v36, %v817_v41  ;;  %v550_v60 = vpop.permute.xlu0 %549 }
 0x1b5   :  { %vm585_vm14 = vcmp.eq.s32.totalorder %v2021_v59, 3  ;;  %v995_v9 = vsub.f32 %v2155_v23, %v803_v29  ;;  %vm601_vm9 = vcmp.eq.s32.totalorder %v2021_v59, 6  ;;  %vm913_vm0 = vcmp.eq.f32.partialorder %v1999_v55, inf  ;;  %v1272_v36 = vpop.eup %1271 }
 0x1b6   :  { %v1008_v17 = vadd.f32 0.3, %v992_v16  ;;  %vm2682_vm12 = vcmp.eq.s32.totalorder %v2044_v1, 3  ;;  %v1013_v32 = vadd.f32 0.3, %v997_v42  ;;  %v914_v50 = vsel %vm913_vm0, %v1999_v55, %v2094_v15 }
 0x1b7   :  { %vm2420_vm15 = vmor %vm2682_vm12, %vm605_vm5  ;;  %vm915_vm6 = vcmp.eq.f32.partialorder %v1999_v55, 0.0  ;;  %v916_v23 = vand.u32 2147483648, %v1999_v55  ;;  %vm2685_vm13 = vcmp.eq.s32.totalorder %v2035_v6, 3  ;;  %v1011_v1 = vadd.f32 0.3, %v995_v9 }
 0x1b8   :  { %vm2432_vm8 = vmor %vm2685_vm13, %vm603_vm7  ;;  %vm2688_vm5 = vcmp.eq.s32.totalorder %v1555_v5, %v1592_v27  ;;  %v1024_v43 = vmax.f32 %v1008_v17, 0.0  ;;  %v784_v15 = vmul.f32 %v1272_v36, %v2315_v61  ;;  %v1029_v57 = vmax.f32 %v1013_v32, 0.0 }
 0x1b9   :  { %vm632_vm11 = vmand %vm2688_vm5, %vm616_vm10  ;;  %v826_v34 = vmul.f32 %v1270_v47, %v2228_v25  ;;  %vm785_vm1 = vcmp.eq.f32.partialorder %v2315_v61, inf  ;;  %v788_v56 = vand.u32 2147483648, %v2315_v61  ;;  %v1027_v6 = vmax.f32 %v1011_v1, 0.0 }
 0x1ba   :  { %vm2689_vm7 = vcmp.eq.s32.totalorder %v1576_v18, %v1592_v27  ;;  %v954_v5 = vmul.f32 %v2203_v44, %v2048_v33  ;;  %v1040_v45 = vsel %vm632_vm11, %v1024_v43, 0.0  ;;  %v786_v52 = vsel %vm785_vm1, %v2315_v61, %v784_v15 }
 0x1bb   :  { %vm637_vm4 = vmand %vm2689_vm7, %vm2420_vm15  ;;  %vm787_vm2 = vcmp.eq.f32.partialorder %v2315_v61, 0.0  ;;  %vm2690_vm3 = vcmp.eq.s32.totalorder %v1567_v11, %v1592_v27  ;;  %1060 = vadd.xlane.f32.xlu1 %v1040_v45  ;;  %v917_v18 = vsel %vm915_vm6, %v916_v23, %v914_v50  ;;  %vm827_vm0 = vcmp.eq.f32.partialorder %v2228_v25, inf }
 0x1bc   :  { %vm635_vm10 = vmand %vm2690_vm3, %vm2432_vm8  ;;  %v1045_v10 = vsel %vm637_vm4, %v1029_v57, 0.0  ;;  %v789_v62 = vsel %vm787_vm2, %v788_v56, %v786_v52  ;;  %v828_v39 = vsel %vm827_vm0, %v2228_v25, %v826_v34  ;;  %v830_v61 = vand.u32 2147483648, %v2228_v25 }
 0x1bd   :  { %v1043_v26 = vsel %vm635_vm10, %v1027_v6, 0.0  ;;  %v993_v44 = vsub.f32 %v917_v18, %v789_v62  ;;  %vm955_vm12 = vcmp.eq.f32.partialorder %v2048_v33, inf  ;;  %vm617_vm15 = vmor %vm585_vm14, %vm601_vm9  ;;  %vm829_vm13 = vcmp.eq.f32.partialorder %v2228_v25, 0.0 }
 0x1be   :  { %v956_v55 = vsel %vm955_vm12, %v2048_v33, %v954_v5  ;;  %v831_v38 = vsel %vm829_vm13, %v830_v61, %v828_v39  ;;  %v958_v31 = vand.u32 2147483648, %v2048_v33  ;;  %vm957_vm6 = vcmp.eq.f32.partialorder %v2048_v33, 0.0 }
 0x1bf   :  { %v1009_v11 = vadd.f32 0.3, %v993_v44  ;;  %1064 = vadd.xlane.f32.xlu1 %v1042_v20  ;;  %vm2691_vm8 = vcmp.eq.s32.totalorder %v1559_v7, %v1592_v27  ;;  %v575_v22 = vmul.u32 %v1989_v37, %v547_v63  ;;  %v872_v7 = vmax.f32 %v1926_v54, 1e-12 }
 0x1c0   :  { %vm633_vm5 = vmand %vm2691_vm8, %vm617_vm15  ;;  %v959_v0 = vsel %vm957_vm6, %v958_v31, %v956_v55  ;;  %v874_v2 = vmax.f32 %v1913_v28, 1e-12  ;;  %vm2693_vm1 = vcmp.eq.s32.totalorder %v2692_v4, %v1592_v27  ;;  %v746_v40 = vmax.f32 %v2179_v49, 1e-12  ;;  %v2700_v4 = vld [vmem:[#allocation6_spill] sm:$0xff] }
 0x1c1   :  { %v1025_v46 = vmax.f32 %v1009_v11, 0.0  ;;  %v999_v3 = vsub.f32 %v959_v0, %v831_v38  ;;  %vm591_vm14 = vcmp.eq.s32.totalorder %v575_v22, 3  ;;  %vm607_vm9 = vcmp.eq.s32.totalorder %v575_v22, 6 }
 0x1c2   :  { %vm623_vm11 = vmor %vm591_vm14, %vm607_vm9  ;;  %1273 = vrsqrt.f32 %v872_v7  ;;  %v2491_v28 = vmax.f32 %v2248_v12, 1e-12  ;;  %vm962_vm4 = vcmp.eq.f32.partialorder %v872_v7, inf  ;;  %vm964_vm2 = vcmp.eq.f32.partialorder %v872_v7, 0.0 }
 0x1c3   :  { %v1041_v59 = vsel %vm633_vm5, %v1025_v46, 0.0  ;;  %1068 = vadd.xlane.f32.xlu1 %v2383_v30  ;;  %v1015_v25 = vadd.f32 0.3, %v999_v3  ;;  %vm639_vm7 = vmand %vm2693_vm1, %vm623_vm11  ;;  %v2694_v30 = vld [vmem:[#allocation10_spill] sm:$0xff]  ;;  %1275 = vrsqrt.f32 %v874_v2  ;;  %vm848_vm3 = vcmp.eq.f32.partialorder %v746_v40, inf }
 0x1c4   :  { %1062 = vadd.xlane.f32.xlu0 %v1041_v59  ;;  %v2484_v24 = vmax.f32 %v2694_v30, 1e-12  ;;  %1277 = vrsqrt.f32 %v746_v40  ;;  %vm976_vm10 = vcmp.eq.f32.partialorder %v874_v2, inf  ;;  %v965_v17 = vand.u32 2147483648, %v872_v7 }
 0x1c5   :  { %v1031_v33 = vmax.f32 %v1015_v25, 0.0  ;;  %vm978_vm0 = vcmp.eq.f32.partialorder %v874_v2, 0.0  ;;  %v576_v50 = vmul.u32 %v1989_v37, %v550_v60  ;;  %v851_v23 = vand.u32 2147483648, %v746_v40 }
 0x1c6   :  { %1279 = vrsqrt.f32 %v2484_v24  ;;  %v979_v21 = vand.u32 2147483648, %v874_v2  ;;  %vm969_vm12 = vcmp.eq.f32.partialorder %v2484_v24, inf  ;;  %vm850_vm15 = vcmp.eq.f32.partialorder %v746_v40, 0.0 }
 0x1c7   :  { %1072 = vadd.xlane.f32.xlu1 %v2328_v51  ;;  %v1047_v13 = vsel %vm639_vm7, %v1031_v33, 0.0  ;;  %v2695_v51 = vld [vmem:[#allocation11_spill] sm:$0xff]  ;;  %vm592_vm8 = vcmp.eq.s32.totalorder %v576_v50, 3  ;;  %vm608_vm5 = vcmp.eq.s32.totalorder %v576_v50, 6  ;;  %v972_v39 = vand.u32 2147483648, %v2484_v24 }
 0x1c8   :  { %1066 = vadd.xlane.f32.xlu0 %v1043_v26  ;;  %v2488_v54 = vmax.f32 %v2695_v51, 1e-12  ;;  %vm971_vm11 = vcmp.eq.f32.partialorder %v2484_v24, 0.0  ;;  %vm855_vm1 = vcmp.eq.f32.partialorder %v2491_v28, inf  ;;  %vm2509_vm7 = vmor %vm592_vm8, %vm608_vm5  ;;  %v858_v0 = vand.u32 2147483648, %v2491_v28 }
 0x1ca   :  { %1281 = vrsqrt.f32 %v2488_v54  ;;  %v986_v3 = vand.u32 2147483648, %v2488_v54 }
 0x1cb   :  { %1283 = vrsqrt.f32 %v2491_v28 }
 0x1cc   :  { %1070 = vadd.xlane.f32.xlu0 %v1045_v10  ;;  %v1274_v49 = vpop.eup %1273 }
 0x1cd   :  { %v1276_v35 = vpop.eup %1275  ;;  %v961_v53 = vmul.f32 %v1274_v49, %v872_v7 }
 0x1ce   :  { %v1278_v14 = vpop.eup %1277  ;;  %v975_v16 = vmul.f32 %v1276_v35, %v874_v2 }
 0x1cf   :  { %v847_v41 = vmul.f32 %v1278_v14, %v746_v40  ;;  %v963_v42 = vsel %vm962_vm4, %v872_v7, %v961_v53  ;;  %vm983_vm4 = vcmp.eq.f32.partialorder %v2488_v54, inf }
 0x1d0   :  { %1074 = vadd.xlane.f32.xlu0 %v1047_v13  ;;  %v1280_v47 = vpop.eup %1279  ;;  %v977_v32 = vsel %vm976_vm10, %v874_v2, %v975_v16  ;;  %v966_v15 = vsel %vm964_vm2, %v965_v17, %v963_v42  ;;  %vm2701_vm10 = vcmp.eq.s32.totalorder %v2700_v4, %v1592_v27 }
 0x1d1   :  { %v968_v12 = vmul.f32 %v1280_v47, %v2484_v24  ;;  %v849_v8 = vsel %vm848_vm3, %v746_v40, %v847_v41  ;;  %v980_v6 = vsel %vm978_vm0, %v979_v21, %v977_v32  ;;  %vm857_vm3 = vcmp.eq.f32.partialorder %v2491_v28, 0.0  ;;  %vm640_vm0 = vmand %vm2701_vm10, %vm2509_vm7  ;;  %v2704_v47 = vld [vmem:[#allocation7_spill] sm:$0xff] }
 0x1d2   :  { %v852_v56 = vsel %vm850_vm15, %v851_v23, %v849_v8 }
 0x1d3   :  { %v725_v58 = vpop.xlane.xlu1 %724  ;;  %v970_v57 = vsel %vm969_vm12, %v2484_v24, %v968_v12  ;;  %v1002_v44 = vsub.f32 %v980_v6, %v852_v56 }
 0x1d4   :  { %v744_v48 = vmax.f32 %v725_v58, 1e-12  ;;  %v1282_v29 = vpop.eup %1281  ;;  %v973_v38 = vsel %vm971_vm11, %v972_v39, %v970_v57 }
 0x1d5   :  { %v1284_v9 = vpop.eup %1283  ;;  %v982_v10 = vmul.f32 %v1282_v29, %v2488_v54  ;;  %v1018_v33 = vadd.f32 0.3, %v1002_v44 }
 0x1d6   :  { %1285 = vrsqrt.f32 %v744_v48  ;;  %vm834_vm13 = vcmp.eq.f32.partialorder %v744_v48, inf  ;;  %v837_v34 = vand.u32 2147483648, %v744_v48  ;;  %vm836_vm6 = vcmp.eq.f32.partialorder %v744_v48, 0.0 }
 0x1d7   :  { %v553_v1 = vpop.permute.xlu1 %552  ;;  %v854_v52 = vmul.f32 %v1284_v9, %v2491_v28  ;;  %v984_v59 = vsel %vm983_vm4, %v2488_v54, %v982_v10  ;;  %v1034_v58 = vmax.f32 %v1018_v33, 0.0  ;;  %vm2705_vm4 = vcmp.eq.s32.totalorder %v2704_v47, %v1592_v27 }
 0x1d8   :  { %v577_v46 = vmul.u32 %v1989_v37, %v553_v1 }
 0x1d9   :  { %v856_v31 = vsel %vm855_vm1, %v2491_v28, %v854_v52 }
 0x1da   :  { %v859_v13 = vsel %vm857_vm3, %v858_v0, %v856_v31  ;;  %vm609_vm8 = vcmp.eq.s32.totalorder %v577_v46, 6 }
 0x1db   :  { %v727_v19 = vpop.xlane.xlu0 %726  ;;  %v559_v61 = vpop.permute.xlu1 %558 }
 0x1dc   :  { %v2495_v20 = vmax.f32 %v727_v19, 1e-12  ;;  %v579_v2 = vmul.u32 %v1989_v37, %v559_v61  ;;  %v2706_v19 = vld [vmem:[#allocation9_spill] sm:$0xff] }
 0x1de   :  { %1287 = vrsqrt.f32 %v2495_v20  ;;  %vm841_vm12 = vcmp.eq.f32.partialorder %v2495_v20, inf  ;;  %v844_v40 = vand.u32 2147483648, %v2495_v20  ;;  %vm843_vm15 = vcmp.eq.f32.partialorder %v2495_v20, 0.0 }
 0x1df   :  { %vm611_vm11 = vcmp.eq.s32.totalorder %v579_v2, 6 }
 0x1e0   :  { %v1286_v36 = vpop.eup %1285 }
 0x1e1   :  { %v833_v43 = vmul.f32 %v1286_v36, %v744_v48 }
 0x1e3   :  { %v556_v5 = vpop.permute.xlu0 %555  ;;  %v835_v45 = vsel %vm834_vm13, %v744_v48, %v833_v43  ;;  %vm985_vm13 = vcmp.eq.f32.partialorder %v2488_v54, 0.0 }
 0x1e4   :  { %v578_v62 = vmul.u32 %v1989_v37, %v556_v5  ;;  %v838_v18 = vsel %vm836_vm6, %v837_v34, %v835_v45  ;;  %vm593_vm6 = vcmp.eq.s32.totalorder %v577_v46, 3  ;;  %v2702_v37 = vld [vmem:[#allocation8_spill] sm:$0xff]  ;;  %v987_v28 = vsel %vm985_vm13, %v986_v3, %v984_v59 }
 0x1e5   :  { %v1000_v26 = vsub.f32 %v966_v15, %v838_v18  ;;  %vm2703_vm5 = vcmp.eq.s32.totalorder %v2702_v37, %v1592_v27  ;;  %v1003_v49 = vsub.f32 %v987_v28, %v859_v13  ;;  %vm625_vm1 = vmor %vm593_vm6, %vm609_vm8 }
 0x1e6   :  { %vm594_vm14 = vcmp.eq.s32.totalorder %v578_v62, 3  ;;  %vm610_vm9 = vcmp.eq.s32.totalorder %v578_v62, 6  ;;  %vm641_vm3 = vmand %vm2705_vm4, %vm625_vm1 }
 0x1e7   :  { %v1016_v55 = vadd.f32 0.3, %v1000_v26  ;;  %vm2521_vm2 = vmor %vm594_vm14, %vm610_vm9  ;;  %vm595_vm9 = vcmp.eq.s32.totalorder %v579_v2, 3  ;;  %v1019_v14 = vadd.f32 0.3, %v1003_v49 }
 0x1e8   :  { %v1288_v63 = vpop.eup %1287  ;;  %vm642_vm14 = vmand %vm2703_vm5, %vm2521_vm2  ;;  %vm2707_vm2 = vcmp.eq.s32.totalorder %v2706_v19, %v1592_v27 }
 0x1e9   :  { %v1032_v22 = vmax.f32 %v1016_v55, 0.0  ;;  %v840_v7 = vmul.f32 %v1288_v63, %v2495_v20  ;;  %v1050_v35 = vsel %vm642_vm14, %v1034_v58, 0.0  ;;  %vm627_vm7 = vmor %vm595_vm9, %vm611_vm11  ;;  %v1035_v41 = vmax.f32 %v1019_v14, 0.0 }
 0x1ea   :  { %vm643_vm10 = vmand %vm2707_vm2, %vm627_vm7 }
 0x1eb   :  { %v1048_v30 = vsel %vm640_vm0, %v1032_v22, 0.0  ;;  %v842_v24 = vsel %vm841_vm12, %v2495_v20, %v840_v7  ;;  %v1051_v16 = vsel %vm643_vm10, %v1035_v41, 0.0  ;;  %vm1105_vm0 = vcmask 0  }
 0x1ec   :  { %1076 = vadd.xlane.f32.xlu1 %v1048_v30  ;;  %v845_v51 = vsel %vm843_vm15, %v844_v40, %v842_v24 }
 0x1ed   :  { %v1001_v48 = vsub.f32 %v973_v38, %v845_v51 }
 0x1ef   :  { %v1017_v60 = vadd.f32 0.3, %v1001_v48 }
 0x1f0   :  { %1080 = vadd.xlane.f32.xlu1 %v1050_v35 }
 0x1f1   :  { %v1033_v54 = vmax.f32 %v1017_v60, 0.0 }
 0x1f3   :  { %v1049_v53 = vsel %vm641_vm3, %v1033_v54, 0.0 }
 0x1f4   :  { %1078 = vadd.xlane.f32.xlu0 %v1049_v53 }
 0x1f8   :  { %1082 = vadd.xlane.f32.xlu0 %v1051_v16 }
 0x237   :  { %v1053_v20 = vpop.xlane.xlu0 %1052 }
 0x23b   :  { %v1057_v29 = vpop.xlane.xlu0 %1056 }
 0x23d   :  { %v1055_v12 = vpop.xlane.xlu1 %1054 }
 0x23e   :  { %v1084_v42 = vadd.f32 %v1055_v12, %v1053_v20 }
 0x23f   :  { %v1059_v17 = vpop.xlane.xlu0 %1058 }
 0x240   :  { %v1085_v9 = vadd.f32 %v1084_v42, %v1057_v29 }
 0x242   :  { %v1086_v32 = vadd.f32 %v1085_v9, %v1059_v17 }
 0x248   :  { %v1061_v8 = vpop.xlane.xlu1 %1060 }
 0x249   :  { %v1087_v50 = vadd.f32 %v1086_v32, %v1061_v8 }
 0x24c   :  { %v1065_v21 = vpop.xlane.xlu1 %1064 }
 0x250   :  { %v1069_v27 = vpop.xlane.xlu1 %1068 }
 0x251   :  { %v1063_v36 = vpop.xlane.xlu0 %1062 }
 0x252   :  { %v1088_v23 = vadd.f32 %v1087_v50, %v1063_v36 }
 0x254   :  { %v1089_v1 = vadd.f32 %v1088_v23, %v1065_v21  ;;  %v1073_v6 = vpop.xlane.xlu1 %1072 }
 0x255   :  { %v1067_v43 = vpop.xlane.xlu0 %1066 }
 0x256   :  { %v1090_v15 = vadd.f32 %v1089_v1, %v1067_v43 }
 0x258   :  { %v1091_v57 = vadd.f32 %v1090_v15, %v1069_v27 }
 0x259   :  { %v1071_v34 = vpop.xlane.xlu0 %1070 }
 0x25a   :  { %v1092_v56 = vadd.f32 %v1091_v57, %v1071_v34 }
 0x25c   :  { %v1093_v5 = vadd.f32 %v1092_v56, %v1073_v6 }
 0x25d   :  { %v1075_v45 = vpop.xlane.xlu0 %1074 }
 0x25e   :  { %v1094_v10 = vadd.f32 %v1093_v5, %v1075_v45 }
 0x279   :  { %v1077_v52 = vpop.xlane.xlu1 %1076 }
 0x27a   :  { %v1095_v62 = vadd.f32 %v1094_v10, %v1077_v52 }
 0x27d   :  { %v1081_v44 = vpop.xlane.xlu1 %1080 }
 0x281   :  { %v1079_v18 = vpop.xlane.xlu0 %1078 }
 0x282   :  { %v1096_v26 = vadd.f32 %v1095_v62, %v1079_v18 }
 0x284   :  { %v1097_v39 = vadd.f32 %v1096_v26, %v1081_v44 }
 0x285   :  { %v1083_v61 = vpop.xlane.xlu0 %1082 }
 0x286   :  { %v1098_v11 = vadd.f32 %v1097_v39, %v1083_v61 }
 0x288   :  { %v1099_v55 = vrot.slane %v1098_v11, 4 }
 0x28a   :  { %v1100_v38 = vadd.f32 %v1099_v55, %v1098_v11 }
 0x28c   :  { %v1101_v31 = vrot.slane %v1100_v38, 2 }
 0x28e   :  { %v1102_v63 = vadd.f32 %v1101_v31, %v1100_v38 }
 0x290   :  { %v1103_v46 = vrot.slane %v1102_v63, 1 }
 0x292   :  { %v1104_v0 = vadd.f32 %v1103_v46, %v1102_v63 }
 0x294   :  { %1106 = vst.msk [vmem:[#allocation2] sm:$0x1] %vm1105_vm0, %v1104_v0 }
 0x295   :  { %1300 = shalt.err (!%p1297_p4)
}
 0x296   :  { %s1301_s30 = scalar_lea.hbm %s2570_s9, 16 }
 0x297   :  { %p1302_p5 = scmp.ne.s32.totalorder %s2570_s9, %s1301_s30  ;;  %p1305_p6 = scmp.lt.u32.totalorder %s1301_s30, %s2570_s9 }
 0x299   :  { %p1307_p7 = pnand %p1305_p6, %p1302_p5 }
 0x29b   :  { %1310 = shalt.err (!%p1307_p7)
}
 0x29c   :  { %1116 = dma.vmem_to_hbm [thread:$0]  %s1114_s26, 16, %s2570_s9, [#allocation3]  }
 0x29d   :  { %1311 = dma.done.wait [#allocation3], 16  }
 0x29e   :  { %1312 = vsyncadd [#allocation3], 4294967280 }
 0x29f   :  { %1120 = vsyncpa [#allocation3], 1 }

</bundles_post_ra>
